<compile_context>
chip_gen: v6e
topology: v6e:2x2x1
jax: 0.10.0
libtpu: 0.0.40
codegen_flags: <defaults>
</compile_context>

<pallas_src>
import math
from typing import NamedTuple, Optional

import jax
import jax.numpy as jnp
from jax.experimental import pallas as pl
from jax.experimental.pallas import tpu as pltpu


def _round_up(x: int, m: int) -> int:
    return (x + m - 1) // m * m


def _cdiv(a: int, b: int) -> int:
    return (a + b - 1) // b


# --------------------------------------------------------------------------
# Kernel
# --------------------------------------------------------------------------
def _swiglu_kernel(x_ref, w13_ref, w2_ref, o_ref, acc_ref):
    # x_ref:   (tm, d_model)        native activation dtype (cast in-kernel)
    # w13_ref: (d_model, 2*tf)      compute dtype (W1 tile || W3 tile, fused)
    # w2_ref:  (tf, d_model)        compute dtype
    # o_ref:   (tm, d_model)        output dtype
    # acc_ref: (tm, d_model)        f32 scratch accumulator
    j = pl.program_id(1)

    @pl.when(j == 0)
    def _():
        acc_ref[...] = jnp.zeros_like(acc_ref)

    tf = w2_ref.shape[0]
    # 128/256-lane sub-chunks bound the live f32 intermediate (h1/h3/gated)
    # so it never spills vregs; static trip count (1-4), fully unrolled.
    chunk = 256 if tf % 256 == 0 else 128
    n_chunks = tf // chunk

    # In-kernel activation downcast: avoids a separate wrapper-level cast pass
    # over the activations (HBM traffic + extra launch).
    x = x_ref[...].astype(w13_ref.dtype)

    for c in range(n_chunks):                      # static, unrolled
        s = c * chunk
        # MXU matmuls with f32 accumulation (lane-dense chunk-wide RHS).
        h1 = jnp.dot(x, w13_ref[:, s:s + chunk],
                     preferred_element_type=jnp.float32)
        h3 = jnp.dot(x, w13_ref[:, tf + s:tf + s + chunk],
                     preferred_element_type=jnp.float32)
        # SwiGLU gate in f32 (EUP sigmoid); downcast only for the 2nd matmul.
        gated = (h1 * jax.nn.sigmoid(h1) * h3).astype(w2_ref.dtype)
        acc_ref[...] += jnp.dot(gated, w2_ref[s:s + chunk, :],
                                preferred_element_type=jnp.float32)

    @pl.when(j == pl.num_programs(1) - 1)
    def _():
        o_ref[...] = acc_ref[...].astype(o_ref.dtype)


# --------------------------------------------------------------------------
# Per-generation defaults
# --------------------------------------------------------------------------
def _derive_defaults(d_model: int):
    """Returns (tm_target, tf_target, vmem_limit_bytes, two_tensorcores)."""
    kind = ""
    try:
        kind = jax.devices()[0].device_kind.lower()
    except Exception:
        pass
    is_v5 = "v5" in kind
    is_v7 = "v7" in kind

    try:
        vmem_bytes = int(pltpu.get_tpu_info().vmem_capacity_bytes)
    except Exception:
        vmem_bytes = (64 if is_v7 else 128) * 1024 * 1024

    # Row tile: v5e is already MXU-bound at 256; v6e/v7x want 512 for weight
    # reuse (each row tile re-streams W1/W3/W2 once from HBM).
    tm = 256 if is_v5 else 512
    # d_ff tile: halve on v7x for very large d_model so the w13 double buffer
    # (2 * d_model * 2tf * 2B) fits comfortably in the 64 MiB/TC VMEM.
    tf = 256 if (is_v7 and d_model >= 8192) else 512
    # VMEM limit: physical minus headroom for compiler scratch, capped at 96 MiB.
    vmem_limit = min(96 * 1024 * 1024,
                     max(vmem_bytes - 8 * 1024 * 1024, 32 * 1024 * 1024))
    return tm, tf, vmem_limit, is_v7


# --------------------------------------------------------------------------
# Weight packing (done ONCE at weight-load time, not per forward call)
# --------------------------------------------------------------------------
class PackedSwiGLU(NamedTuple):
    w13: jax.Array       # (nft, d_model, 2*tf)   compute dtype
    w2: jax.Array        # (d_ff_pad, d_model)    compute dtype
    d_model: int
    d_ff: int
    d_ff_pad: int
    tf: int


def pack_swiglu_weights(w1, w3, w2, *, tf_target: Optional[int] = None,
                        compute_dtype=jnp.bfloat16) -> PackedSwiGLU:
    """Fuse W1||W3 per d_ff tile, pad d_ff, cast to the MXU compute dtype.

    Call this once when loading weights; swiglu_forward takes the result.
    Zero padding of d_ff is sound: silu(0)*0 = 0 and the padded W2 rows are 0.
    """
    d_model, d_ff = w1.shape
    assert w3.shape == (d_model, d_ff) and w2.shape == (d_ff, d_model)

    if tf_target is None:
        _, tf_target, _, _ = _derive_defaults(d_model)
    # Pick nft first, then tf, so padding never exceeds ~one 128-lane group
    # per tile (avoids e.g. d_ff=704 -> 1024 over-padding).
    tf_target = max(128, min(_round_up(tf_target, 128), _round_up(d_ff, 128)))
    nft = _cdiv(d_ff, tf_target)
    tf = _round_up(_cdiv(d_ff, nft), 128)
    d_ff_pad = nft * tf

    if d_ff_pad != d_ff:
        w1 = jnp.pad(w1, ((0, 0), (0, d_ff_pad - d_ff)))
        w3 = jnp.pad(w3, ((0, 0), (0, d_ff_pad - d_ff)))
        w2 = jnp.pad(w2, ((0, d_ff_pad - d_ff), (0, 0)))

    # w13[j] = [w1_tile_j | w3_tile_j]  -> (nft, d_model, 2*tf)
    w13 = jnp.concatenate(
        [w1.reshape(d_model, nft, tf), w3.reshape(d_model, nft, tf)], axis=-1)
    w13 = jnp.transpose(w13, (1, 0, 2)).astype(compute_dtype)
    w2c = w2.astype(compute_dtype)
    return PackedSwiGLU(w13=w13, w2=w2c, d_model=d_model, d_ff=d_ff,
                        d_ff_pad=d_ff_pad, tf=tf)


# --------------------------------------------------------------------------
# Forward
# --------------------------------------------------------------------------
def swiglu_forward(x, packed: PackedSwiGLU, *, tm: Optional[int] = None,
                   out_dtype=None, vmem_limit_bytes: Optional[int] = None,
                   single_buffer_row_blocks: bool = False):
    """SwiGLU forward: (silu(x@W1) * (x@W3)) @ W2, with pre-packed weights."""
    d_model = packed.d_model
    assert x.shape[-1] == d_model
    lead = x.shape[:-1]
    x2 = x.reshape(-1, d_model)
    M = x2.shape[0]

    tm_default, _, vmem_default, two_tc = _derive_defaults(d_model)
    if tm is None:
        tm = tm_default
    if vmem_limit_bytes is None:
        vmem_limit_bytes = vmem_default
    if out_dtype is None:
        out_dtype = x.dtype

    # Row tile: multiple of 16 (bf16 packs (16,128) per vreg), clamped so tiny
    # inputs don't over-pad, and capped so >=2 row tiles exist on 2-TC chips
    # (the "parallel" i axis is what shards across TensorCores).
    tm = _round_up(max(tm, 16), 16)
    tm = min(tm, _round_up(max(M, 16), 16))
    if two_tc and M > 16:
        tm = min(tm, _round_up(_cdiv(M, 2), 16))
    M_pad = _round_up(M, tm)
    if M_pad != M:
        x2 = jnp.pad(x2, ((0, M_pad - M), (0, 0)))

    tf = packed.tf
    d_ff_pad = packed.d_ff_pad
    nft = d_ff_pad // tf
    n_rows = M_pad // tm

    # x / out block indices are constant along the inner (reduction) axis, so
    # they can be single-buffered to free VMEM for bigger tm (v7x, opt-in).
    if single_buffer_row_blocks:
        x_spec = pl.BlockSpec((tm, d_model), lambda i, j: (i, 0),
                              pipeline_mode=pl.Buffered(1))
        o_spec = pl.BlockSpec((tm, d_model), lambda i, j: (i, 0),
                              pipeline_mode=pl.Buffered(1))
    else:
        x_spec = pl.BlockSpec((tm, d_model), lambda i, j: (i, 0))
        o_spec = pl.BlockSpec((tm, d_model), lambda i, j: (i, 0))

    cbytes = jnp.dtype(packed.w13.dtype).itemsize
    cost = pl.CostEstimate(
        flops=6 * M_pad * d_model * d_ff_pad,
        transcendentals=M_pad * d_ff_pad,
        bytes_accessed=(M_pad * d_model * x2.dtype.itemsize
                        + n_rows * 3 * d_model * d_ff_pad * cbytes
                        + M_pad * d_model * jnp.dtype(out_dtype).itemsize),
    )

    out = pl.pallas_call(
        _swiglu_kernel,
        out_shape=jax.ShapeDtypeStruct((M_pad, d_model), out_dtype),
        grid_spec=pltpu.PrefetchScalarGridSpec(
            num_scalar_prefetch=0,
            grid=(n_rows, nft),                       # reduction (d_ff) last
            in_specs=[
                x_spec,
                pl.BlockSpec((pl.Squeezed(), d_model, 2 * tf),
                             lambda i, j: (j, 0, 0)),
                pl.BlockSpec((tf, d_model), lambda i, j: (j, 0)),
            ],
            out_specs=o_spec,
            scratch_shapes=[pltpu.VMEM((tm, d_model), jnp.float32)],
        ),
        compiler_params=pltpu.CompilerParams(
            dimension_semantics=("parallel", "arbitrary"),
            vmem_limit_bytes=int(vmem_limit_bytes),
        ),
        cost_estimate=cost,
    )(x2, packed.w13, packed.w2)

    return out[:M].reshape(*lead, d_model)


def swiglu_forward_unpacked(x, w1, w3, w2, **kwargs):
    """Convenience one-shot path (packs weights inline — avoid in hot loops)."""
    return swiglu_forward(x, pack_swiglu_weights(w1, w3, w2), **kwargs)


# --------------------------------------------------------------------------
# Parameter init / reference (match the PyTorch module)
# --------------------------------------------------------------------------
def init_swiglu_params(key, d_model, dtype=jnp.float32):
    """Matches PyTorch __init__: d_ff = round_up(int(8/3*d_model), 64),
    trunc-normal(std=sqrt(2/(d_ff+d_model)), clipped at +/-3*std)."""
    d_ff_base = int(8 / 3 * d_model)
    d_ff = (d_ff_base + 63) // 64 * 64
    std_w = math.sqrt(2.0 / (d_ff + d_model))
    k1, k2, k3 = jax.random.split(key, 3)

    def trunc(k, shape):
        return (jax.random.truncated_normal(k, -3.0, 3.0, shape, jnp.float32)
                * std_w).astype(dtype)

    # Stored pre-transposed relative to torch nn.Linear.weight:
    w1 = trunc(k1, (d_model, d_ff))   # torch w1.weight: (d_ff, d_model)
    w3 = trunc(k3, (d_model, d_ff))
    w2 = trunc(k2, (d_ff, d_model))   # torch w2.weight: (d_model, d_ff)
    return w1, w3, w2, d_ff


def swiglu_reference(x, w1, w3, w2, compute_dtype=jnp.bfloat16):
    """Pure-JAX reference mimicking the kernel's bf16-MXU / f32-accum math."""
    xc = x.astype(compute_dtype)
    h1 = jnp.dot(xc, w1.astype(compute_dtype), preferred_element_type=jnp.float32)
    h3 = jnp.dot(xc, w3.astype(compute_dtype), preferred_element_type=jnp.float32)
    g = (h1 * jax.nn.sigmoid(h1) * h3).astype(compute_dtype)
    out = jnp.dot(g, w2.astype(compute_dtype), preferred_element_type=jnp.float32)
    return out.astype(x.dtype)


if __name__ == "__main__":
    d_model = 128          # -> d_ff = int(8/3*128)=341 -> rounded to 384
    batch, seq = 2, 96     # flattened M = 192

    key = jax.random.PRNGKey(0)
    kx, kp = jax.random.split(key)
    x = jax.random.normal(kx, (batch, seq, d_model), dtype=jnp.float32)
    w1, w3, w2, d_ff = init_swiglu_params(kp, d_model, dtype=jnp.float32)

    ref = swiglu_reference(x, w1, w3, w2)

    # Weights packed ONCE (weight-load time), reused by every forward call.
    packed = pack_swiglu_weights(w1, w3, w2)
    out = jax.block_until_ready(swiglu_forward(x, packed))
    assert out.shape == x.shape
    err = jnp.max(jnp.abs(out.astype(jnp.float32) - ref.astype(jnp.float32)))
    assert jnp.allclose(out, ref, atol=1e-2, rtol=1e-2), \
        f"mismatch vs reference (auto tiles), max err {err}"

    # Multi-tile path: small tm forces row padding, small tf forces d_ff
    # accumulation across the inner grid axis (exercises pl.when init/final).
    packed_small = pack_swiglu_weights(w1, w3, w2, tf_target=128)
    out2 = jax.block_until_ready(swiglu_forward(x, packed_small, tm=80))
    err2 = jnp.max(jnp.abs(out2.astype(jnp.float32) - ref.astype(jnp.float32)))
    assert jnp.allclose(out2, ref, atol=1e-2, rtol=1e-2), \
        f"mismatch vs reference (small tiles), max err {err2}"

    print("KERNEL_OK")
</pallas_src>

<mosaic_0001>
module attributes {stable_mosaic.version = 11 : i64} {
  func.func @_swiglu_kernel(%arg0: i32, %arg1: i32, %arg2: memref<192x128xf32, #tpu.memory_space<vmem>>, %arg3: memref<1x128x768xbf16, #tpu.memory_space<vmem>>, %arg4: memref<384x128xbf16, #tpu.memory_space<vmem>>, %arg5: memref<192x128xf32, #tpu.memory_space<vmem>>, %arg6: memref<192x128xf32, #tpu.memory_space<vmem>>) attributes {dimension_semantics = [#tpu.dimension_semantics<parallel>, #tpu.dimension_semantics<arbitrary>], iteration_bounds = array<i64: 1, 1>, scalar_prefetch = 0 : i64, scratch_operands = 1 : i64, tpu.core_type = #tpu.core_type<tc>, window_params = [{transform_indices = @transform_0, window_bounds = array<i64: 192, 128>}, {transform_indices = @transform_1, window_bounds = array<i64: 1, 128, 768>}, {transform_indices = @transform_2, window_bounds = array<i64: 384, 128>}, {transform_indices = @transform_3, window_bounds = array<i64: 192, 128>}]} {
    %c0_i32 = arith.constant 0 : i32
    %0 = arith.cmpi eq, %arg1, %c0_i32 : i32
    %1 = arith.extui %0 : i1 to i32
    %c0_i32_0 = arith.constant 0 : i32
    %2 = arith.cmpi ne, %1, %c0_i32_0 : i32
    scf.if %2 {
      %cst_46 = arith.constant 0.000000e+00 : f32
      %65 = vector.broadcast %cst_46 : f32 to vector<192x128xf32>
      %c0_47 = arith.constant 0 : index
      %c0_48 = arith.constant 0 : index
      %66 = vector.load %arg6[%c0_47, %c0_48] : memref<192x128xf32, #tpu.memory_space<vmem>>, vector<192x128xf32>
      tpu.vector_store %arg6[%c0_47, %c0_48], %65 {strides = array<i32>} : memref<192x128xf32, #tpu.memory_space<vmem>>, vector<192x128xf32>,
    } else {
    }
    %c0 = arith.constant 0 : index
    %c0_1 = arith.constant 0 : index
    %3 = vector.load %arg2[%c0, %c0_1] : memref<192x128xf32, #tpu.memory_space<vmem>>, vector<192x128xf32>
    %4 = arith.truncf %3 : vector<192x128xf32> to vector<192x128xbf16>
    %c0_2 = arith.constant 0 : index
    %c0_3 = arith.constant 0 : index
    %c0_4 = arith.constant 0 : index
    %5 = vector.load %arg3[%c0_2, %c0_3, %c0_4] : memref<1x128x768xbf16, #tpu.memory_space<vmem>>, vector<1x128x128xbf16>
    %6 = vector.shape_cast %5 : vector<1x128x128xbf16> to vector<128x128xbf16>
    %cst = arith.constant dense<0.000000e+00> : vector<192x128xf32>
    %7 = tpu.matmul %4, %6, %cst {dimension_numbers = #tpu.dot_dimension_numbers<[1], [0], [0], [1], [0, 0, 1, 1], [], []>} : vector<192x128xbf16>, vector<128x128xbf16>, vector<192x128xf32> -> vector<192x128xf32>
    %c0_5 = arith.constant 0 : index
    %c0_6 = arith.constant 0 : index
    %c384 = arith.constant 384 : index
    %8 = vector.load %arg3[%c0_5, %c0_6, %c384] : memref<1x128x768xbf16, #tpu.memory_space<vmem>>, vector<1x128x128xbf16>
    %9 = vector.shape_cast %8 : vector<1x128x128xbf16> to vector<128x128xbf16>
    %cst_7 = arith.constant dense<0.000000e+00> : vector<192x128xf32>
    %10 = tpu.matmul %4, %9, %cst_7 {dimension_numbers = #tpu.dot_dimension_numbers<[1], [0], [0], [1], [0, 0, 1, 1], [], []>} : vector<192x128xbf16>, vector<128x128xbf16>, vector<192x128xf32> -> vector<192x128xf32>
    %11 = arith.negf %7 : vector<192x128xf32>
    %12 = math.exp %11 : vector<192x128xf32>
    %cst_8 = arith.constant 1.000000e+00 : f32
    %13 = vector.broadcast %cst_8 : f32 to vector<192x128xf32>
    %14 = arith.addf %13, %12 : vector<192x128xf32>
    %15 = arith.divf %13, %14 : vector<192x128xf32>
    %16 = arith.mulf %7, %15 : vector<192x128xf32>
    %17 = arith.mulf %16, %10 : vector<192x128xf32>
    %18 = arith.truncf %17 : vector<192x128xf32> to vector<192x128xbf16>
    %c0_9 = arith.constant 0 : index
    %c0_10 = arith.constant 0 : index
    %19 = vector.load %arg6[%c0_9, %c0_10] : memref<192x128xf32, #tpu.memory_space<vmem>>, vector<192x128xf32>
    %c0_11 = arith.constant 0 : index
    %c0_12 = arith.constant 0 : index
    %20 = vector.load %arg4[%c0_11, %c0_12] : memref<384x128xbf16, #tpu.memory_space<vmem>>, vector<128x128xbf16>
    %cst_13 = arith.constant dense<0.000000e+00> : vector<192x128xf32>
    %21 = tpu.matmul %18, %20, %cst_13 {dimension_numbers = #tpu.dot_dimension_numbers<[1], [0], [0], [1], [0, 0, 1, 1], [], []>} : vector<192x128xbf16>, vector<128x128xbf16>, vector<192x128xf32> -> vector<192x128xf32>
    %22 = arith.addf %19, %21 : vector<192x128xf32>
    %c0_14 = arith.constant 0 : index
    %c0_15 = arith.constant 0 : index
    %23 = vector.load %arg6[%c0_14, %c0_15] : memref<192x128xf32, #tpu.memory_space<vmem>>, vector<192x128xf32>
    tpu.vector_store %arg6[%c0_14, %c0_15], %22 {strides = array<i32>} : memref<192x128xf32, #tpu.memory_space<vmem>>, vector<192x128xf32>,
    %c0_16 = arith.constant 0 : index
    %c0_17 = arith.constant 0 : index
    %c128 = arith.constant 128 : index
    %24 = vector.load %arg3[%c0_16, %c0_17, %c128] : memref<1x128x768xbf16, #tpu.memory_space<vmem>>, vector<1x128x128xbf16>
    %25 = vector.shape_cast %24 : vector<1x128x128xbf16> to vector<128x128xbf16>
    %cst_18 = arith.constant dense<0.000000e+00> : vector<192x128xf32>
    %26 = tpu.matmul %4, %25, %cst_18 {dimension_numbers = #tpu.dot_dimension_numbers<[1], [0], [0], [1], [0, 0, 1, 1], [], []>} : vector<192x128xbf16>, vector<128x128xbf16>, vector<192x128xf32> -> vector<192x128xf32>
    %c0_19 = arith.constant 0 : index
    %c0_20 = arith.constant 0 : index
    %c512 = arith.constant 512 : index
    %27 = vector.load %arg3[%c0_19, %c0_20, %c512] : memref<1x128x768xbf16, #tpu.memory_space<vmem>>, vector<1x128x128xbf16>
    %28 = vector.shape_cast %27 : vector<1x128x128xbf16> to vector<128x128xbf16>
    %cst_21 = arith.constant dense<0.000000e+00> : vector<192x128xf32>
    %29 = tpu.matmul %4, %28, %cst_21 {dimension_numbers = #tpu.dot_dimension_numbers<[1], [0], [0], [1], [0, 0, 1, 1], [], []>} : vector<192x128xbf16>, vector<128x128xbf16>, vector<192x128xf32> -> vector<192x128xf32>
    %30 = arith.negf %26 : vector<192x128xf32>
    %31 = math.exp %30 : vector<192x128xf32>
    %cst_22 = arith.constant 1.000000e+00 : f32
    %32 = vector.broadcast %cst_22 : f32 to vector<192x128xf32>
    %33 = arith.addf %32, %31 : vector<192x128xf32>
    %34 = arith.divf %32, %33 : vector<192x128xf32>
    %35 = arith.mulf %26, %34 : vector<192x128xf32>
    %36 = arith.mulf %35, %29 : vector<192x128xf32>
    %37 = arith.truncf %36 : vector<192x128xf32> to vector<192x128xbf16>
    %c0_23 = arith.constant 0 : index
    %c0_24 = arith.constant 0 : index
    %38 = vector.load %arg6[%c0_23, %c0_24] : memref<192x128xf32, #tpu.memory_space<vmem>>, vector<192x128xf32>
    %c128_25 = arith.constant 128 : index
    %c0_26 = arith.constant 0 : index
    %39 = vector.load %arg4[%c128_25, %c0_26] : memref<384x128xbf16, #tpu.memory_space<vmem>>, vector<128x128xbf16>
    %cst_27 = arith.constant dense<0.000000e+00> : vector<192x128xf32>
    %40 = tpu.matmul %37, %39, %cst_27 {dimension_numbers = #tpu.dot_dimension_numbers<[1], [0], [0], [1], [0, 0, 1, 1], [], []>} : vector<192x128xbf16>, vector<128x128xbf16>, vector<192x128xf32> -> vector<192x128xf32>
    %41 = arith.addf %38, %40 : vector<192x128xf32>
    %c0_28 = arith.constant 0 : index
    %c0_29 = arith.constant 0 : index
    %42 = vector.load %arg6[%c0_28, %c0_29] : memref<192x128xf32, #tpu.memory_space<vmem>>, vector<192x128xf32>
    tpu.vector_store %arg6[%c0_28, %c0_29], %41 {strides = array<i32>} : memref<192x128xf32, #tpu.memory_space<vmem>>, vector<192x128xf32>,
    %c0_30 = arith.constant 0 : index
    %c0_31 = arith.constant 0 : index
    %c256 = arith.constant 256 : index
    %43 = vector.load %arg3[%c0_30, %c0_31, %c256] : memref<1x128x768xbf16, #tpu.memory_space<vmem>>, vector<1x128x128xbf16>
    %44 = vector.shape_cast %43 : vector<1x128x128xbf16> to vector<128x128xbf16>
    %cst_32 = arith.constant dense<0.000000e+00> : vector<192x128xf32>
    %45 = tpu.matmul %4, %44, %cst_32 {dimension_numbers = #tpu.dot_dimension_numbers<[1], [0], [0], [1], [0, 0, 1, 1], [], []>} : vector<192x128xbf16>, vector<128x128xbf16>, vector<192x128xf32> -> vector<192x128xf32>
    %c0_33 = arith.constant 0 : index
    %c0_34 = arith.constant 0 : index
    %c640 = arith.constant 640 : index
    %46 = vector.load %arg3[%c0_33, %c0_34, %c640] : memref<1x128x768xbf16, #tpu.memory_space<vmem>>, vector<1x128x128xbf16>
    %47 = vector.shape_cast %46 : vector<1x128x128xbf16> to vector<128x128xbf16>
    %cst_35 = arith.constant dense<0.000000e+00> : vector<192x128xf32>
    %48 = tpu.matmul %4, %47, %cst_35 {dimension_numbers = #tpu.dot_dimension_numbers<[1], [0], [0], [1], [0, 0, 1, 1], [], []>} : vector<192x128xbf16>, vector<128x128xbf16>, vector<192x128xf32> -> vector<192x128xf32>
    %49 = arith.negf %45 : vector<192x128xf32>
    %50 = math.exp %49 : vector<192x128xf32>
    %cst_36 = arith.constant 1.000000e+00 : f32
    %51 = vector.broadcast %cst_36 : f32 to vector<192x128xf32>
    %52 = arith.addf %51, %50 : vector<192x128xf32>
    %53 = arith.divf %51, %52 : vector<192x128xf32>
    %54 = arith.mulf %45, %53 : vector<192x128xf32>
    %55 = arith.mulf %54, %48 : vector<192x128xf32>
    %56 = arith.truncf %55 : vector<192x128xf32> to vector<192x128xbf16>
    %c0_37 = arith.constant 0 : index
    %c0_38 = arith.constant 0 : index
    %57 = vector.load %arg6[%c0_37, %c0_38] : memref<192x128xf32, #tpu.memory_space<vmem>>, vector<192x128xf32>
    %c256_39 = arith.constant 256 : index
    %c0_40 = arith.constant 0 : index
    %58 = vector.load %arg4[%c256_39, %c0_40] : memref<384x128xbf16, #tpu.memory_space<vmem>>, vector<128x128xbf16>
    %cst_41 = arith.constant dense<0.000000e+00> : vector<192x128xf32>
    %59 = tpu.matmul %56, %58, %cst_41 {dimension_numbers = #tpu.dot_dimension_numbers<[1], [0], [0], [1], [0, 0, 1, 1], [], []>} : vector<192x128xbf16>, vector<128x128xbf16>, vector<192x128xf32> -> vector<192x128xf32>
    %60 = arith.addf %57, %59 : vector<192x128xf32>
    %c0_42 = arith.constant 0 : index
    %c0_43 = arith.constant 0 : index
    %61 = vector.load %arg6[%c0_42, %c0_43] : memref<192x128xf32, #tpu.memory_space<vmem>>, vector<192x128xf32>
    tpu.vector_store %arg6[%c0_42, %c0_43], %60 {strides = array<i32>} : memref<192x128xf32, #tpu.memory_space<vmem>>, vector<192x128xf32>,
    %c0_i32_44 = arith.constant 0 : i32
    %62 = arith.cmpi eq, %arg1, %c0_i32_44 : i32
    %63 = arith.extui %62 : i1 to i32
    %c0_i32_45 = arith.constant 0 : i32
    %64 = arith.cmpi ne, %63, %c0_i32_45 : i32
    scf.if %64 {
      %c0_46 = arith.constant 0 : index
      %c0_47 = arith.constant 0 : index
      %65 = vector.load %arg6[%c0_46, %c0_47] : memref<192x128xf32, #tpu.memory_space<vmem>>, vector<192x128xf32>
      %c0_48 = arith.constant 0 : index
      %c0_49 = arith.constant 0 : index
      %66 = vector.load %arg5[%c0_48, %c0_49] : memref<192x128xf32, #tpu.memory_space<vmem>>, vector<192x128xf32>
      tpu.vector_store %arg5[%c0_48, %c0_49], %65 {strides = array<i32>} : memref<192x128xf32, #tpu.memory_space<vmem>>, vector<192x128xf32>,
    } else {
    }
    return
  }
  func.func @transform_0(%arg0: i32, %arg1: i32) -> (i32, i32) {
    %c0_i32 = arith.constant 0 : i32
    %c0_i32_0 = arith.constant 0 : i32
    return %arg0, %c0_i32 : i32, i32
  }
  func.func @transform_1(%arg0: i32, %arg1: i32) -> (i32, i32, i32) {
    %c0_i32 = arith.constant 0 : i32
    %c0_i32_0 = arith.constant 0 : i32
    %c0_i32_1 = arith.constant 0 : i32
    return %arg1, %c0_i32, %c0_i32_0 : i32, i32, i32
  }
  func.func @transform_2(%arg0: i32, %arg1: i32) -> (i32, i32) {
    %c0_i32 = arith.constant 0 : i32
    %c0_i32_0 = arith.constant 0 : i32
    return %arg1, %c0_i32 : i32, i32
  }
  func.func @transform_3(%arg0: i32, %arg1: i32) -> (i32, i32) {
    %c0_i32 = arith.constant 0 : i32
    %c0_i32_0 = arith.constant 0 : i32
    return %arg0, %c0_i32 : i32, i32
  }
}

</mosaic_0001>

<bundles_post_ra>
// kernel: tpu_custom_call.1
= control target key start
LH: loop header
LB: loop body
LE: loop exit
PB: predicated region body
PF: predicated region fallthrough
CT: control target
= control target key end

     0   :  { %8 = vsyncpa [#allocation4], 0  ;;  %s4546_s0 = inlined_call_operand.hbm [shape: f32[192,128], index: 0, kind: input, shape index: {}]   ;;  %s4547_s1 = inlined_call_operand.hbm [shape: bf16[1,128,768], index: 1, kind: input, shape index: {}]   ;;  %s4548_s2 = inlined_call_operand.hbm [shape: bf16[384,128], index: 2, kind: input, shape index: {}]   ;;  %s4549_s3 = inlined_call_operand.hbm [shape: f32[192,128], index: 3, kind: output, shape index: {}]  }
   0x1   :  { %9 = vsyncpa [#allocation7], 0 }
   0x2   :  { %10 = vsyncpa [#allocation5], 0  ;;  %s3911_s12 = smov [#allocation6]  }
   0x3   :  { %s28_s13 = sshll.u32 %s3911_s12, 4  ;;  %s29_s13 = int_to_ptr.vmem [resolvable:$true] %s28_s13 }
   0x4   :  { %s3833_s14 = scalar_lea.vmem %s29_s13, 6144  ;;  %p3838_p1 = scmp.lt.s32.totalorder %s29_s13, %s29_s13 }
   0x5   :  { %p3834_p0 = scmp.ne.s32.totalorder %s29_s13, %s3833_s14  ;;  %p3839_p2 = scmp.lt.s32.totalorder %s3833_s14, %s3833_s14 }
   0x7   :  { %p3840_p3 = por %p3839_p2, %p3838_p1 }
   0x9   :  { %p3841_p4 = pnand %p3840_p3, %p3834_p0 }
   0xb   :  { %3844 = shalt.err (!%p3841_p4)
}
   0xc   :  { %s3912_s15 = smov 384   ;;  %s3913_s16 = smov 24  }
   0xd   :  { %34 = dma.hbm_to_vmem [thread:$0]  %s4547_s1, 6144, %s29_s13, [#allocation7], %s3912_s15, %s3912_s15, %s3913_s16  }
   0xe   :  { %s3914_s19 = smov [#allocation3]  }
   0xf   :  { %s16_s20 = sshll.u32 %s3914_s19, 4  ;;  %s17_s20 = int_to_ptr.vmem [resolvable:$true] %s16_s20 }
  0x10   :  { %s3853_s21 = scalar_lea.vmem %s17_s20, 3072  ;;  %p3858_p6 = scmp.lt.s32.totalorder %s17_s20, %s17_s20 }
  0x11   :  { %p3854_p5 = scmp.ne.s32.totalorder %s17_s20, %s3853_s21  ;;  %p3859_p7 = scmp.lt.s32.totalorder %s3853_s21, %s3853_s21 }
  0x13   :  { %p3860_p8 = por %p3859_p7, %p3858_p6 }
  0x15   :  { %p3861_p9 = pnand %p3860_p8, %p3854_p5 }
  0x17   :  { %3864 = shalt.err (!%p3861_p9)
}
  0x18   :  { %s3915_s22 = smov 128   ;;  %s3916_s23 = smov 8  }
  0x19   :  { %22 = dma.hbm_to_vmem [thread:$0]  %s4546_s0, 3072, %s17_s20, [#allocation4], %s3915_s22, %s3915_s22, %s3916_s23  }
  0x1a   :  { %s3917_s1 = smov [#allocation8]  }
  0x1b   :  { %s40_s26 = sshll.u32 %s3917_s1, 4  ;;  %s41_s26 = int_to_ptr.vmem [resolvable:$true] %s40_s26 }
  0x1c   :  { %s3873_s27 = scalar_lea.vmem %s41_s26, 3072  ;;  %p3878_p11 = scmp.lt.s32.totalorder %s41_s26, %s41_s26 }
  0x1d   :  { %p3874_p10 = scmp.ne.s32.totalorder %s41_s26, %s3873_s27  ;;  %p3879_p12 = scmp.lt.s32.totalorder %s3873_s27, %s3873_s27 }
  0x1f   :  { %p3880_p13 = por %p3879_p12, %p3878_p11 }
  0x21   :  { %p3881_p0 = pnand %p3880_p13, %p3874_p10 }
  0x23   :  { %3884 = shalt.err (!%p3881_p0)
}
  0x24   :  { %s3918_s28 = smov 64   ;;  %s3919_s29 = smov 4  }
  0x25   :  { %46 = dma.hbm_to_vmem [thread:$0]  %s4548_s2, 3072, %s41_s26, [#allocation7], %s3918_s28, %s3918_s28, %s3919_s29  }
  0x26   :  { %3905 = dma.done.wait [#allocation4], 3072  }
  0x27   :  { %3906 = vsyncadd [#allocation4], 4294964224 }
  0x28   :  { %3907 = dma.done.wait [#allocation7], 9216  }
  0x29   :  { %3908 = vsyncadd [#allocation7], 4294958080  ;;  %v3465_v0 = vld [vmem:[#allocation6 + $0x150] ss:$24 sps:$4 sm:$0xff]   ;;  %v3466_v1 = vld [vmem:[#allocation6 + $0x120] ss:$24 sps:$4 sm:$0xff]  }
  0x2a   :  { %3079 = vmatprep.subr.bf16.mxu0 %v3465_v0  ;;  %v3467_v2 = vld [vmem:[#allocation6 + $0xf0] ss:$24 sps:$4 sm:$0xff]   ;;  %v3468_v3 = vld [vmem:[#allocation6 + $0xc0] ss:$24 sps:$4 sm:$0xff]   ;;  %v3473_v4 = vld [vmem:[#allocation6 + $0x15c] ss:$24 sps:$4 sm:$0xff]  }
  0x2b   :  { %3080 = vmatpush3.bf16.msra.mxu0 %v3465_v0  ;;  %v85_v5 = vld [vmem:[#allocation3] sm:$0xff]  ;;  %v86_v6 = vld [vmem:[#allocation3 + $0x8] sm:$0xff]  ;;  %3119 = vmatprep.subr.bf16.mxu1 %v3473_v4  ;;  %v3475_v10 = vld [vmem:[#allocation6 + $0xfc] ss:$24 sps:$4 sm:$0xff]   ;;  %s3920_s0 = smov [#allocation9]  }
  0x2c   :  { %3081 = vmatprep.subr.bf16.mxu0 %v3466_v1  ;;  %v3953_v7 = vpack.c.bf16 %v86_v6, %v85_v5  ;;  %3120 = vmatpush3.bf16.msra.mxu1 %v3473_v4  ;;  %v3474_v8 = vld [vmem:[#allocation6 + $0x12c] ss:$24 sps:$4 sm:$0xff]   ;;  %v3469_v9 = vld [vmem:[#allocation6 + $0x90] ss:$24 sps:$4 sm:$0xff]   ;;  %v3470_v11 = vld [vmem:[#allocation6 + $0x60] ss:$24 sps:$4 sm:$0xff]  }
  0x2d   :  { %3121 = vmatprep.subr.bf16.mxu1 %v3474_v8  ;;  %v3476_v12 = vld [vmem:[#allocation6 + $0xcc] ss:$24 sps:$4 sm:$0xff]   ;;  %v3471_v13 = vld [vmem:[#allocation6 + $0x30] ss:$24 sps:$4 sm:$0xff]   ;;  %v3477_v14 = vld [vmem:[#allocation6 + $0x9c] ss:$24 sps:$4 sm:$0xff]  }
  0x2e   :  { %3095 = vmatprep.mubr.bf16.mxu0 %v3953_v7  ;;  %3135 = vmatprep.mubr.bf16.mxu1 %v3953_v7  ;;  %v3472_v15 = vld [vmem:[#allocation6] ss:$24 sps:$4 sm:$0xff]   ;;  %v3478_v16 = vld [vmem:[#allocation6 + $0x6c] ss:$24 sps:$4 sm:$0xff]   ;;  %v87_v17 = vld [vmem:[#allocation3 + $0x10] sm:$0xff]  ;;  %s2742_s2 = sshll.u32 %s3920_s0, 4  ;;  %s2743_s2 = int_to_ptr.vmem [resolvable:$true] %s2742_s2 }
  0x2f   :  { %3082 = vmatpush3.bf16.msra.mxu0 %v3466_v1  ;;  %v88_v18 = vld [vmem:[#allocation3 + $0x18] sm:$0xff]  ;;  %v89_v19 = vld [vmem:[#allocation3 + $0x20] sm:$0xff]  ;;  %v90_v20 = vld [vmem:[#allocation3 + $0x28] sm:$0xff]  ;;  %s3885_s5 = scalar_lea.vmem %s2743_s2, 3072  ;;  %p3890_p2 = scmp.lt.s32.totalorder %s2743_s2, %s2743_s2 }
  0x30   :  { %3083 = vmatprep.subr.bf16.mxu0 %v3467_v2  ;;  %3122 = vmatpush3.bf16.msra.mxu1 %v3474_v8  ;;  %v3479_v21 = vld [vmem:[#allocation6 + $0x3c] ss:$24 sps:$4 sm:$0xff]   ;;  %v3957_v23 = vpack.c.bf16 %v88_v18, %v87_v17  ;;  %v3480_v24 = vld [vmem:[#allocation6 + $0xc] ss:$24 sps:$4 sm:$0xff]   ;;  %v3959_v25 = vpack.c.bf16 %v90_v20, %v89_v19  ;;  %v4012_v4 = vld [vmem:[#allocation6 + $0x160] ss:$24 sps:$4 sm:$0xff]   ;;  %p3886_p1 = scmp.ne.s32.totalorder %s2743_s2, %s3885_s5  ;;  %p3891_p3 = scmp.lt.s32.totalorder %s3885_s5, %s3885_s5 }
  0x31   :  { %3123 = vmatprep.subr.bf16.mxu1 %v3475_v10  ;;  %v3483_v22 = vld [vmem:[#allocation8 + $0x38] sm:$0xff]   ;;  %v91_v26 = vld [vmem:[#allocation3 + $0x30] sm:$0xff]  ;;  %v93_v28 = vld [vmem:[#allocation3 + $0x40] sm:$0xff] }
  0x32   :  { %v92_v27 = vld [vmem:[#allocation3 + $0x38] sm:$0xff]  ;;  %v94_v29 = vld [vmem:[#allocation3 + $0x48] sm:$0xff]  ;;  %v95_v34 = vld [vmem:[#allocation3 + $0x50] sm:$0xff]  ;;  %p3892_p4 = por %p3891_p3, %p3890_p2 }
  0x33   :  { %3084 = vmatpush3.bf16.msra.mxu0 %v3467_v2  ;;  %v3481_v30 = vld [vmem:[#allocation6 + $0x154] ss:$24 sps:$4 sm:$0xff]   ;;  %v3963_v31 = vpack.c.bf16 %v92_v27, %v91_v26  ;;  %v3965_v32 = vpack.c.bf16 %v94_v29, %v93_v28  ;;  %v3482_v33 = vld [vmem:[#allocation6 + $0x124] ss:$24 sps:$4 sm:$0xff]  }
  0x34   :  { %3085 = vmatprep.subr.bf16.mxu0 %v3468_v3  ;;  %3124 = vmatpush3.bf16.msra.mxu1 %v3475_v10  ;;  %v96_v35 = vld [vmem:[#allocation3 + $0x58] sm:$0xff]  ;;  %v97_v36 = vld [vmem:[#allocation3 + $0x60] sm:$0xff]  ;;  %v98_v37 = vld [vmem:[#allocation3 + $0x68] sm:$0xff]  ;;  %p3893_p5 = pnand %p3892_p4, %p3886_p1 }
  0x35   :  { %3125 = vmatprep.subr.bf16.mxu1 %v3476_v12  ;;  %v3484_v38 = vld [vmem:[#allocation6 + $0xf4] ss:$24 sps:$4 sm:$0xff]   ;;  %v3971_v39 = vpack.c.bf16 %v96_v35, %v95_v34  ;;  %v3973_v40 = vpack.c.bf16 %v98_v37, %v97_v36  ;;  %v100_v42 = vld [vmem:[#allocation3 + $0x78] sm:$0xff]  ;;  %v101_v43 = vld [vmem:[#allocation3 + $0x80] sm:$0xff] }
  0x36   :  { %v99_v41 = vld [vmem:[#allocation3 + $0x70] sm:$0xff]  ;;  %v102_v44 = vld [vmem:[#allocation3 + $0x88] sm:$0xff]  ;;  %v104_v48 = vld [vmem:[#allocation3 + $0x98] sm:$0xff] }
  0x37   :  { %3086 = vmatpush3.bf16.msra.mxu0 %v3468_v3  ;;  %v3979_v45 = vpack.c.bf16 %v100_v42, %v99_v41  ;;  %v3981_v46 = vpack.c.bf16 %v102_v44, %v101_v43  ;;  %v103_v47 = vld [vmem:[#allocation3 + $0x90] sm:$0xff]  ;;  %v105_v49 = vld [vmem:[#allocation3 + $0xa0] sm:$0xff]  ;;  %v106_v50 = vld [vmem:[#allocation3 + $0xa8] sm:$0xff] }
  0x38   :  { %3087 = vmatprep.subr.bf16.mxu0 %v3469_v9  ;;  %3126 = vmatpush3.bf16.msra.mxu1 %v3476_v12  ;;  %v3987_v51 = vpack.c.bf16 %v104_v48, %v103_v47  ;;  %v3989_v52 = vpack.c.bf16 %v106_v50, %v105_v49  ;;  %v107_v53 = vld [vmem:[#allocation3 + $0xb0] sm:$0xff]  ;;  %v108_v54 = vld [vmem:[#allocation3 + $0xb8] sm:$0xff]  ;;  %v3488_v62 = vld [vmem:[#allocation8 + $0x28] sm:$0xff]  }
  0x39   :  { %3127 = vmatprep.subr.bf16.mxu1 %v3477_v14  ;;  %v3995_v55 = vpack.c.bf16 %v108_v54, %v107_v53  ;;  %v3485_v56 = vld [vmem:[#allocation6 + $0xc4] ss:$24 sps:$4 sm:$0xff]   ;;  %v3487_v57 = vld [vmem:[#allocation6 + $0x94] ss:$24 sps:$4 sm:$0xff]  }
  0x3a   :  { %v3489_v58 = vld [vmem:[#allocation6 + $0x64] ss:$24 sps:$4 sm:$0xff]   ;;  %v3490_v59 = vld [vmem:[#allocation6 + $0x34] ss:$24 sps:$4 sm:$0xff]  }
  0x3b   :  { %3088 = vmatpush3.bf16.msra.mxu0 %v3469_v9  ;;  %v3486_v60 = vld [vmem:[#allocation8 + $0x30] sm:$0xff]   ;;  %v3492_v61 = vld [vmem:[#allocation6 + $0x4] ss:$24 sps:$4 sm:$0xff]   ;;  %v3495_v2 = vld [vmem:[#allocation8 + $0x8] sm:$0xff]  }
  0x3c   :  { %3089 = vmatprep.subr.bf16.mxu0 %v3470_v11  ;;  %3128 = vmatpush3.bf16.msra.mxu1 %v3477_v14  ;;  %v3491_v63 = vld [vmem:[#allocation8 + $0x20] sm:$0xff]   ;;  %v3493_v0 = vld [vmem:[#allocation8 + $0x18] sm:$0xff]   ;;  %v3494_v1 = vld [vmem:[#allocation8 + $0x10] sm:$0xff]  }
  0x3d   :  { %3129 = vmatprep.subr.bf16.mxu1 %v3478_v16  ;;  %v3496_v3 = vld [vmem:[#allocation8] sm:$0xff]  }
  0x3f   :  { %3090 = vmatpush3.bf16.msra.mxu0 %v3470_v11 }
  0x40   :  { %3091 = vmatprep.subr.bf16.mxu0 %v3471_v13  ;;  %3130 = vmatpush3.bf16.msra.mxu1 %v3478_v16 }
  0x41   :  { %3131 = vmatprep.subr.bf16.mxu1 %v3479_v21 }
  0x43   :  { %3092 = vmatpush3.bf16.msra.mxu0 %v3471_v13 }
  0x44   :  { %3093 = vmatprep.subr.bf16.mxu0 %v3472_v15  ;;  %3132 = vmatpush3.bf16.msra.mxu1 %v3479_v21 }
  0x45   :  { %3133 = vmatprep.subr.bf16.mxu1 %v3480_v24 }
  0x47   :  { %3094 = vmatpush3.bf16.msra.mxu0 %v3472_v15 }
  0x48   :  { %3159 = vmatprep.subr.bf16.mxu0 %v3483_v22  ;;  %3134 = vmatpush3.bf16.msra.mxu1 %v3480_v24 }
  0x49   :  { %3199 = vmatprep.subr.bf16.mxu1 %v3481_v30 }
  0x4a   :  { %3096 = vmatmul.mubr.bf16.vlgmr.msra.gmra.mxu0 %v3957_v23 }
  0x4b   :  { %3099 = vmatprep.mubr.bf16.mxu0 %v3959_v25  ;;  %3160 = vmatpush3.bf16.msra.mxu0 %v3483_v22 }
  0x4c   :  { %3136 = vmatmul.mubr.bf16.vlgmr.msra.gmra.mxu1 %v3957_v23  ;;  %3161 = vmatprep.subr.bf16.mxu0 %v3486_v60 }
  0x4d   :  { %3139 = vmatprep.mubr.bf16.mxu1 %v3959_v25  ;;  %3200 = vmatpush3.bf16.msra.mxu1 %v3481_v30 }
  0x4e   :  { %3201 = vmatprep.subr.bf16.mxu1 %v3482_v33 }
  0x4f   :  { %3162 = vmatpush3.bf16.msra.mxu0 %v3486_v60 }
  0x50   :  { %3163 = vmatprep.subr.bf16.mxu0 %v3488_v62 }
  0x51   :  { %3202 = vmatpush3.bf16.msra.mxu1 %v3482_v33 }
  0x52   :  { %3100 = vmatmul.mubr.bf16.gmra.mxu0 %v3963_v31  ;;  %3203 = vmatprep.subr.bf16.mxu1 %v3484_v38 }
  0x53   :  { %3103 = vmatprep.mubr.bf16.mxu0 %v3965_v32  ;;  %3164 = vmatpush3.bf16.msra.mxu0 %v3488_v62 }
  0x54   :  { %3140 = vmatmul.mubr.bf16.gmra.mxu1 %v3963_v31  ;;  %3165 = vmatprep.subr.bf16.mxu0 %v3491_v63 }
  0x55   :  { %3143 = vmatprep.mubr.bf16.mxu1 %v3965_v32  ;;  %3204 = vmatpush3.bf16.msra.mxu1 %v3484_v38 }
  0x56   :  { %3205 = vmatprep.subr.bf16.mxu1 %v3485_v56 }
  0x57   :  { %3166 = vmatpush3.bf16.msra.mxu0 %v3491_v63 }
  0x58   :  { %3167 = vmatprep.subr.bf16.mxu0 %v3493_v0 }
  0x59   :  { %3206 = vmatpush3.bf16.msra.mxu1 %v3485_v56 }
  0x5a   :  { %3104 = vmatmul.mubr.bf16.gmra.mxu0 %v3971_v39  ;;  %3207 = vmatprep.subr.bf16.mxu1 %v3487_v57 }
  0x5b   :  { %3107 = vmatprep.mubr.bf16.mxu0 %v3973_v40  ;;  %3168 = vmatpush3.bf16.msra.mxu0 %v3493_v0 }
  0x5c   :  { %3144 = vmatmul.mubr.bf16.gmra.mxu1 %v3971_v39  ;;  %3169 = vmatprep.subr.bf16.mxu0 %v3494_v1 }
  0x5d   :  { %3147 = vmatprep.mubr.bf16.mxu1 %v3973_v40  ;;  %3208 = vmatpush3.bf16.msra.mxu1 %v3487_v57 }
  0x5e   :  { %3209 = vmatprep.subr.bf16.mxu1 %v3489_v58 }
  0x5f   :  { %3170 = vmatpush3.bf16.msra.mxu0 %v3494_v1 }
  0x60   :  { %3171 = vmatprep.subr.bf16.mxu0 %v3495_v2 }
  0x61   :  { %3210 = vmatpush3.bf16.msra.mxu1 %v3489_v58 }
  0x62   :  { %3108 = vmatmul.mubr.bf16.gmra.mxu0 %v3979_v45  ;;  %3211 = vmatprep.subr.bf16.mxu1 %v3490_v59 }
  0x63   :  { %3111 = vmatprep.mubr.bf16.mxu0 %v3981_v46  ;;  %3172 = vmatpush3.bf16.msra.mxu0 %v3495_v2 }
  0x64   :  { %3148 = vmatmul.mubr.bf16.gmra.mxu1 %v3979_v45  ;;  %3173 = vmatprep.subr.bf16.mxu0 %v3496_v3 }
  0x65   :  { %3151 = vmatprep.mubr.bf16.mxu1 %v3981_v46  ;;  %3212 = vmatpush3.bf16.msra.mxu1 %v3490_v59 }
  0x66   :  { %3213 = vmatprep.subr.bf16.mxu1 %v3492_v61 }
  0x67   :  { %3174 = vmatpush3.bf16.msra.mxu0 %v3496_v3 }
  0x68   :  { %3239 = vmatprep.subr.bf16.mxu0 %v4012_v4 }
  0x69   :  { %3214 = vmatpush3.bf16.msra.mxu1 %v3492_v61 }
  0x6a   :  { %3112 = vmatmul.mubr.bf16.gmra.mxu0 %v3987_v51 }
  0x6b   :  { %3115 = vmatprep.mubr.bf16.mxu0 %v3989_v52 }
  0x6c   :  { %3152 = vmatmul.mubr.bf16.gmra.mxu1 %v3987_v51 }
  0x6d   :  { %3155 = vmatprep.mubr.bf16.mxu1 %v3989_v52 }
  0x72   :  { %3116 = vmatmul.mubr.bf16.gmra.mxu0 %v3995_v55 }
  0x74   :  { %3156 = vmatmul.mubr.bf16.gmra.mxu1 %v3995_v55 }
  0x75   :  { %3215 = vmatprep.mubr.bf16.mxu1 %v3953_v7 }
  0x7c   :  { %3216 = vmatmul.mubr.bf16.vlgmr.msra.gmra.mxu1 %v3957_v23 }
  0x7d   :  { %3219 = vmatprep.mubr.bf16.mxu1 %v3959_v25 }
  0x84   :  { %3220 = vmatmul.mubr.bf16.gmra.mxu1 %v3963_v31 }
  0x85   :  { %3223 = vmatprep.mubr.bf16.mxu1 %v3965_v32 }
  0x8c   :  { %3224 = vmatmul.mubr.bf16.gmra.mxu1 %v3971_v39 }
  0x8d   :  { %3227 = vmatprep.mubr.bf16.mxu1 %v3973_v40 }
  0x94   :  { %3228 = vmatmul.mubr.bf16.gmra.mxu1 %v3979_v45 }
  0x95   :  { %3231 = vmatprep.mubr.bf16.mxu1 %v3981_v46 }
  0x9c   :  { %3232 = vmatmul.mubr.bf16.gmra.mxu1 %v3987_v51 }
  0x9d   :  { %3235 = vmatprep.mubr.bf16.mxu1 %v3989_v52 }
  0xa4   :  { %3236 = vmatmul.mubr.bf16.gmra.mxu1 %v3995_v55 }
 0x10a   :  { %v4016_v5 = vpop.f32.mrf.mxu0 }
 0x10b   :  { %v2773_v6 = vmul.f32 -1.442695, %v4016_v5 }
 0x10c   :  { %v4019_v8 = vpop.f32.mrf.mxu0  ;;  %v4030_v15 = vpop.f32.mrf.mxu1 }
 0x10d   :  { %3537 = vpow2.f32 %v2773_v6  ;;  %v2771_v9 = vmul.f32 -1.442695, %v4019_v8 }
 0x10e   :  { %v4022_v10 = vpop.f32.mrf.mxu0  ;;  %v4035_v18 = vpop.f32.mrf.mxu1 }
 0x10f   :  { %3539 = vpow2.f32 %v2771_v9  ;;  %v2774_v11 = vmul.f32 -1.442695, %v4022_v10 }
 0x110   :  { %v4025_v12 = vpop.f32.mrf.mxu0  ;;  %v4040_v21 = vpop.f32.mrf.mxu1 }
 0x111   :  { %3541 = vpow2.f32 %v2774_v11  ;;  %v2772_v13 = vmul.f32 -1.442695, %v4025_v12 }
 0x112   :  { %v4028_v14 = vpop.f32.mrf.mxu0  ;;  %v4045_v26 = vpop.f32.mrf.mxu1 }
 0x113   :  { %3543 = vpow2.f32 %v2772_v13  ;;  %v2777_v16 = vmul.f32 -1.442695, %v4028_v14 }
 0x114   :  { %v4033_v17 = vpop.f32.mrf.mxu0  ;;  %v4050_v30 = vpop.f32.mrf.mxu1 }
 0x115   :  { %3545 = vpow2.f32 %v2777_v16  ;;  %v2775_v19 = vmul.f32 -1.442695, %v4033_v17 }
 0x116   :  { %v4038_v20 = vpop.f32.mrf.mxu0  ;;  %v4055_v37 = vpop.f32.mrf.mxu1 }
 0x117   :  { %3547 = vpow2.f32 %v2775_v19  ;;  %v2778_v22 = vmul.f32 -1.442695, %v4038_v20 }
 0x118   :  { %v4043_v24 = vpop.f32.mrf.mxu0  ;;  %v4060_v44 = vpop.f32.mrf.mxu1 }
 0x119   :  { %3549 = vpow2.f32 %v2778_v22  ;;  %v2776_v27 = vmul.f32 -1.442695, %v4043_v24 }
 0x11a   :  { %v3538_v28 = vpop.eup %3537  ;;  %v4048_v29 = vpop.f32.mrf.mxu0 }
 0x11b   :  { %v581_v33 = vadd.f32 1.0, %v3538_v28  ;;  %3551 = vpow2.f32 %v2776_v27  ;;  %v2781_v34 = vmul.f32 -1.442695, %v4048_v29  ;;  %v4065_v53 = vpop.f32.mrf.mxu1 }
 0x11c   :  { %v3540_v35 = vpop.eup %3539  ;;  %v4053_v36 = vpop.f32.mrf.mxu0 }
 0x11d   :  { %3553 = vrcp.f32 %v581_v33  ;;  %v579_v38 = vadd.f32 1.0, %v3540_v35  ;;  %v2779_v41 = vmul.f32 -1.442695, %v4053_v36  ;;  %v4070_v59 = vpop.f32.mrf.mxu1 }
 0x11e   :  { %v3542_v42 = vpop.eup %3541  ;;  %3555 = vpow2.f32 %v2781_v34  ;;  %v4058_v43 = vpop.f32.mrf.mxu0 }
 0x11f   :  { %3557 = vrcp.f32 %v579_v38  ;;  %v582_v47 = vadd.f32 1.0, %v3542_v42  ;;  %v2782_v48 = vmul.f32 -1.442695, %v4058_v43  ;;  %v4076_v2 = vpop.f32.mrf.mxu1 }
 0x120   :  { %v3544_v49 = vpop.eup %3543  ;;  %3559 = vpow2.f32 %v2779_v41  ;;  %v4063_v50 = vpop.f32.mrf.mxu0 }
 0x121   :  { %3561 = vrcp.f32 %v582_v47  ;;  %v580_v54 = vadd.f32 1.0, %v3544_v49  ;;  %v2780_v56 = vmul.f32 -1.442695, %v4063_v50  ;;  %v4084_v27 = vpop.f32.mrf.mxu1 }
 0x122   :  { %v3546_v57 = vpop.eup %3545  ;;  %3563 = vpow2.f32 %v2782_v48  ;;  %v4068_v58 = vpop.f32.mrf.mxu0 }
 0x123   :  { %3565 = vrcp.f32 %v580_v54  ;;  %v585_v60 = vadd.f32 1.0, %v3546_v57  ;;  %v2785_v61 = vmul.f32 -1.442695, %v4068_v58  ;;  %v4092_v49 = vpop.f32.mrf.mxu1 }
 0x124   :  { %v3548_v62 = vpop.eup %3547  ;;  %3567 = vpow2.f32 %v2780_v56  ;;  %v4073_v63 = vpop.f32.mrf.mxu0 }
 0x125   :  { %3569 = vrcp.f32 %v585_v60  ;;  %v583_v0 = vadd.f32 1.0, %v3548_v62  ;;  %v2783_v1 = vmul.f32 -1.442695, %v4073_v63 }
 0x126   :  { %v3550_v3 = vpop.eup %3549  ;;  %3571 = vpow2.f32 %v2785_v61  ;;  %v4078_v6 = vpop.f32.mrf.mxu0 }
 0x127   :  { %3573 = vrcp.f32 %v583_v0  ;;  %v586_v9 = vadd.f32 1.0, %v3550_v3  ;;  %v2786_v11 = vmul.f32 -1.442695, %v4078_v6 }
 0x128   :  { %v3552_v13 = vpop.eup %3551  ;;  %3575 = vpow2.f32 %v2783_v1  ;;  %v4081_v16 = vpop.f32.mrf.mxu0 }
 0x129   :  { %3577 = vrcp.f32 %v586_v9  ;;  %v584_v19 = vadd.f32 1.0, %v3552_v13  ;;  %v2784_v22 = vmul.f32 -1.442695, %v4081_v16 }
 0x12a   :  { %v3554_v28 = vpop.eup %3553  ;;  %3579 = vpow2.f32 %v2786_v11  ;;  %v4086_v33 = vpop.f32.mrf.mxu0 }
 0x12b   :  { %v3556_v34 = vpop.eup %3555  ;;  %3581 = vrcp.f32 %v584_v19  ;;  %v2789_v35 = vmul.f32 -1.442695, %v4086_v33  ;;  %v653_v3 = vmul.f32 %v3554_v28, %v4016_v5 }
 0x12c   :  { %v3558_v38 = vpop.eup %3557  ;;  %v589_v41 = vadd.f32 1.0, %v3556_v34  ;;  %3583 = vpow2.f32 %v2784_v22  ;;  %v4089_v42 = vpop.f32.mrf.mxu0 }
 0x12d   :  { %v3560_v47 = vpop.eup %3559  ;;  %3585 = vpow2.f32 %v2789_v35  ;;  %v2787_v48 = vmul.f32 -1.442695, %v4089_v42  ;;  %v651_v61 = vmul.f32 %v3558_v38, %v4019_v8  ;;  %v4104_v34 = vpop.f32.mrf.mxu1 }
 0x12e   :  { %v3562_v54 = vpop.eup %3561  ;;  %3587 = vrcp.f32 %v589_v41  ;;  %v587_v56 = vadd.f32 1.0, %v3560_v47  ;;  %v4094_v57 = vpop.f32.mrf.mxu0 }
 0x12f   :  { %v3564_v60 = vpop.eup %3563  ;;  %v654_v62 = vmul.f32 %v3562_v54, %v4022_v10  ;;  %3589 = vpow2.f32 %v2787_v48  ;;  %v2790_v0 = vmul.f32 -1.442695, %v4094_v57  ;;  %v675_v28 = vmul.f32 %v651_v61, %v4035_v18 }
 0x130   :  { %v3566_v1 = vpop.eup %3565  ;;  %3591 = vrcp.f32 %v587_v56  ;;  %v590_v9 = vadd.f32 1.0, %v3564_v60  ;;  %v4100_v11 = vpop.f32.mrf.mxu0  ;;  %v677_v48 = vmul.f32 %v4030_v15, %v653_v3 }
 0x131   :  { %v3568_v13 = vpop.eup %3567  ;;  %v652_v19 = vmul.f32 %v3566_v1, %v4025_v12  ;;  %3593 = vpow2.f32 %v2790_v0  ;;  %v2788_v22 = vmul.f32 -1.442695, %v4100_v11  ;;  %v678_v35 = vmul.f32 %v4040_v21, %v654_v62  ;;  %v4116_v62 = vpop.f32.mrf.mxu1 }
 0x132   :  { %v3570_v8 = vpop.eup %3569  ;;  %3595 = vrcp.f32 %v590_v9  ;;  %v588_v10 = vadd.f32 1.0, %v3568_v13  ;;  %v4107_v38 = vpop.f32.mrf.mxu0  ;;  %v3498_v9 = vld [vmem:[#allocation6 + $0x130] ss:$24 sps:$4 sm:$0xff]  }
 0x133   :  { %v3572_v5 = vpop.eup %3571  ;;  %v676_v41 = vmul.f32 %v652_v19, %v4045_v26  ;;  %3597 = vpow2.f32 %v2788_v22  ;;  %v2793_v54 = vmul.f32 -1.442695, %v4107_v38  ;;  %v700_v26 = vpack.c.bf16 %v678_v35, %v677_v48 }
 0x134   :  { %v3574_v47 = vpop.eup %3573  ;;  %3599 = vrcp.f32 %v588_v10  ;;  %v593_v12 = vadd.f32 1.0, %v3572_v5  ;;  %v4113_v56 = vpop.f32.mrf.mxu0  ;;  %v657_v10 = vmul.f32 %v3570_v8, %v4028_v14  ;;  %v3499_v8 = vld [vmem:[#allocation6 + $0x100] ss:$24 sps:$4 sm:$0xff]  }
 0x135   :  { %v3576_v60 = vpop.eup %3575  ;;  %v699_v0 = vpack.c.bf16 %v676_v41, %v675_v28  ;;  %v2791_v21 = vmul.f32 -1.442695, %v4113_v56  ;;  %v655_v15 = vmul.f32 %v3574_v47, %v4033_v17  ;;  %v4128_v17 = vpop.f32.mrf.mxu1 }
 0x136   :  { %v3578_v1 = vpop.eup %3577  ;;  %3601 = vrcp.f32 %v593_v12  ;;  %v591_v18 = vadd.f32 1.0, %v3576_v60  ;;  %v4118_v61 = vpop.f32.mrf.mxu0 }
 0x137   :  { %v3580_v13 = vpop.eup %3579  ;;  %v658_v3 = vmul.f32 %v3578_v1, %v4038_v20  ;;  %3603 = vpow2.f32 %v2793_v54  ;;  %v2794_v19 = vmul.f32 -1.442695, %v4118_v61  ;;  %3175 = vmatprep.mubr.bf16.mxu0 %v699_v0  ;;  %v679_v54 = vmul.f32 %v655_v15, %v4055_v37 }
 0x138   :  { %v3582_v22 = vpop.eup %3581  ;;  %3605 = vrcp.f32 %v591_v18  ;;  %v594_v5 = vadd.f32 1.0, %v3580_v13  ;;  %v4124_v28 = vpop.f32.mrf.mxu0  ;;  %3176 = vmatmul.mubr.bf16.vlgmr.msra.gmra.mxu0 %v700_v26  ;;  %v681_v0 = vmul.f32 %v4050_v30, %v657_v10 }
 0x139   :  { %v3584_v35 = vpop.eup %3583  ;;  %v656_v41 = vmul.f32 %v3582_v22, %v4043_v24  ;;  %3607 = vpow2.f32 %v2791_v21  ;;  %3240 = vmatpush3.bf16.msra.mxu0 %v4012_v4  ;;  %v682_v12 = vmul.f32 %v4060_v44, %v658_v3  ;;  %v2792_v14 = vmul.f32 -1.442695, %v4124_v28  ;;  %v4135_v44 = vpop.f32.mrf.mxu1  ;;  %v3500_v3 = vld [vmem:[#allocation6 + $0xd0] ss:$24 sps:$4 sm:$0xff]  }
 0x13a   :  { %v3586_v20 = vpop.eup %3585  ;;  %3609 = vrcp.f32 %v594_v5  ;;  %v592_v47 = vadd.f32 1.0, %v3584_v35  ;;  %3241 = vmatprep.subr.bf16.mxu0 %v3498_v9 }
 0x13b   :  { %v3588_v48 = vpop.eup %3587  ;;  %v680_v60 = vmul.f32 %v656_v41, %v4065_v53  ;;  %3611 = vpow2.f32 %v2794_v19  ;;  %v597_v4 = vadd.f32 1.0, %v3586_v20  ;;  %v702_v13 = vpack.c.bf16 %v682_v12, %v681_v0  ;;  %v4140_v5 = vpop.f32.mrf.mxu1  ;;  %v3501_v41 = vld [vmem:[#allocation6 + $0xa0] ss:$24 sps:$4 sm:$0xff]   ;;  %v3502_v0 = vld [vmem:[#allocation6 + $0x70] ss:$24 sps:$4 sm:$0xff]  }
 0x13c   :  { %v3590_v24 = vpop.eup %3589  ;;  %3613 = vrcp.f32 %v592_v47 }
 0x13d   :  { %v3592_v21 = vpop.eup %3591  ;;  %v595_v1 = vadd.f32 1.0, %v3590_v24  ;;  %v701_v18 = vpack.c.bf16 %v680_v60, %v679_v54  ;;  %3242 = vmatpush3.bf16.msra.mxu0 %v3498_v9  ;;  %3615 = vpow2.f32 %v2792_v14  ;;  %v661_v9 = vmul.f32 %v3588_v48, %v4048_v29 }
 0x13e   :  { %v3594_v26 = vpop.eup %3593  ;;  %3243 = vmatprep.subr.bf16.mxu0 %v3499_v8  ;;  %v659_v19 = vmul.f32 %v3592_v21, %v4053_v36 }
 0x13f   :  { %v3596_v37 = vpop.eup %3595  ;;  %3617 = vrcp.f32 %v595_v1  ;;  %v598_v53 = vadd.f32 1.0, %v3594_v26  ;;  %3179 = vmatprep.mubr.bf16.mxu0 %v701_v18  ;;  %v685_v48 = vmul.f32 %v4070_v59, %v661_v9 }
 0x140   :  { %v3598_v15 = vpop.eup %3597  ;;  %v662_v30 = vmul.f32 %v3596_v37, %v4058_v43  ;;  %3619 = vrcp.f32 %v597_v4  ;;  %3180 = vmatmul.mubr.bf16.gmra.mxu0 %v702_v13  ;;  %v683_v43 = vmul.f32 %v659_v19, %v4076_v2 }
 0x141   :  { %v3600_v22 = vpop.eup %3599  ;;  %3621 = vrcp.f32 %v598_v53  ;;  %v596_v10 = vadd.f32 1.0, %v3598_v15  ;;  %3244 = vmatpush3.bf16.msra.mxu0 %v3499_v8  ;;  %v476_v8 = vpop.f32.mrf.mxu1 }
 0x142   :  { %v660_v35 = vmul.f32 %v3600_v22, %v4063_v50  ;;  %3245 = vmatprep.subr.bf16.mxu0 %v3500_v3  ;;  %v686_v36 = vmul.f32 %v4084_v27, %v662_v30 }
 0x143   :  { %v3602_v20 = vpop.eup %3601  ;;  %3623 = vrcp.f32 %v596_v10  ;;  %v3154_v18 = vpop.f32.mrf.mxu1 }
 0x144   :  { %v3604_v47 = vpop.eup %3603  ;;  %v684_v12 = vmul.f32 %v660_v35, %v4092_v49  ;;  %v704_v4 = vpack.c.bf16 %v686_v36, %v685_v48  ;;  %v665_v1 = vmul.f32 %v3602_v20, %v4068_v58  ;;  %v3504_v35 = vld [vmem:[#allocation6 + $0x10] ss:$24 sps:$4 sm:$0xff]  }
 0x145   :  { %v3606_v14 = vpop.eup %3605  ;;  %v601_v29 = vadd.f32 1.0, %v3604_v47  ;;  %3246 = vmatpush3.bf16.msra.mxu0 %v3500_v3  ;;  %v479_v30 = vpop.f32.mrf.mxu1 }
 0x146   :  { %v3608_v54 = vpop.eup %3607  ;;  %v703_v60 = vpack.c.bf16 %v684_v12, %v683_v43  ;;  %3247 = vmatprep.subr.bf16.mxu0 %v3501_v41  ;;  %v663_v27 = vmul.f32 %v3606_v14, %v4073_v63  ;;  %v3503_v63 = vld [vmem:[#allocation6 + $0x40] ss:$24 sps:$4 sm:$0xff]   ;;  %v689_v19 = vmul.f32 %v4104_v34, %v665_v1  ;;  %v3510_v1 = vld [vmem:[#allocation8 + $0x70] sm:$0xff]  }
 0x147   :  { %v3610_v50 = vpop.eup %3609  ;;  %v599_v24 = vadd.f32 1.0, %v3608_v54  ;;  %3625 = vrcp.f32 %v601_v29  ;;  %v3157_v20 = vpop.f32.mrf.mxu1 }
 0x148   :  { %v3612_v21 = vpop.eup %3611  ;;  %v666_v2 = vmul.f32 %v3610_v50, %v4078_v6  ;;  %3183 = vmatprep.mubr.bf16.mxu0 %v703_v60  ;;  %v687_v53 = vmul.f32 %v663_v27, %v4116_v62 }
 0x149   :  { %v3614_v49 = vpop.eup %3613  ;;  %v602_v59 = vadd.f32 1.0, %v3612_v21  ;;  %3184 = vmatmul.mubr.bf16.gmra.mxu0 %v704_v4  ;;  %3627 = vrcp.f32 %v599_v24 }
 0x14a   :  { %v664_v26 = vmul.f32 %v3614_v49, %v4081_v16  ;;  %3248 = vmatpush3.bf16.msra.mxu0 %v3501_v41  ;;  %v3616_v13 = vpop.eup %3615  ;;  %v690_v3 = vmul.f32 %v4128_v17, %v666_v2  ;;  %v3509_v49 = vld [vmem:[#allocation6 + $0xc8] ss:$24 sps:$4 sm:$0xff]  }
 0x14b   :  { %3629 = vrcp.f32 %v602_v59  ;;  %3249 = vmatprep.subr.bf16.mxu0 %v3502_v0  ;;  %v600_v6 = vadd.f32 1.0, %v3616_v13  ;;  %v3511_v59 = vld [vmem:[#allocation6 + $0x98] ss:$24 sps:$4 sm:$0xff]  }
 0x14c   :  { %v3618_v37 = vpop.eup %3617  ;;  %v688_v58 = vmul.f32 %v664_v26, %v4135_v44  ;;  %v706_v10 = vpack.c.bf16 %v690_v3, %v689_v19  ;;  %v3513_v26 = vld [vmem:[#allocation6 + $0x68] ss:$24 sps:$4 sm:$0xff]   ;;  %v3514_v13 = vld [vmem:[#allocation6 + $0x38] ss:$24 sps:$4 sm:$0xff]  }
 0x14d   :  { %v3620_v15 = vpop.eup %3619  ;;  %3631 = vrcp.f32 %v600_v6  ;;  %v667_v9 = vmul.f32 %v3618_v37, %v4089_v42  ;;  %v3515_v3 = vld [vmem:[#allocation8 + $0x60] sm:$0xff]   ;;  %v3517_v37 = vld [vmem:[#allocation8 + $0x58] sm:$0xff]   ;;  %v3518_v6 = vld [vmem:[#allocation8 + $0x50] sm:$0xff]  }
 0x14e   :  { %v3622_v22 = vpop.eup %3621  ;;  %v705_v16 = vpack.c.bf16 %v688_v58, %v687_v53  ;;  %3250 = vmatpush3.bf16.msra.mxu0 %v3502_v0  ;;  %v669_v62 = vmul.f32 %v3620_v15, %v4086_v33  ;;  %v3519_v53 = vld [vmem:[#allocation8 + $0x48] sm:$0xff]   ;;  %v3520_v58 = vld [vmem:[#allocation8 + $0x40] sm:$0xff]  }
 0x14f   :  { %v670_v17 = vmul.f32 %v3622_v22, %v4094_v57  ;;  %3251 = vmatprep.subr.bf16.mxu0 %v3503_v63  ;;  %v691_v34 = vmul.f32 %v667_v9, %v476_v8  ;;  %v492_v57 = vpop.f32.mrf.mxu1  ;;  %v4183_v15 = vld [vmem:[#allocation6 + $0x164] ss:$24 sps:$4 sm:$0xff]  }
 0x150   :  { %v3624_v41 = vpop.eup %3623  ;;  %3187 = vmatprep.mubr.bf16.mxu0 %v705_v16  ;;  %v693_v42 = vmul.f32 %v4140_v5, %v669_v62 }
 0x151   :  { %v668_v44 = vmul.f32 %v3624_v41, %v4100_v11  ;;  %3188 = vmatmul.mubr.bf16.gmra.mxu0 %v706_v10  ;;  %v694_v36 = vmul.f32 %v3154_v18, %v670_v17  ;;  %v3158_v11 = vpop.f32.mrf.mxu1  ;;  %v3512_v18 = vld [vmem:[#allocation8 + $0x68] sm:$0xff]  }
 0x152   :  { %3252 = vmatpush3.bf16.msra.mxu0 %v3503_v63  ;;  %v3516_v63 = vld [vmem:[#allocation6 + $0x8] ss:$24 sps:$4 sm:$0xff]  }
 0x153   :  { %v692_v47 = vmul.f32 %v668_v44, %v479_v30  ;;  %3253 = vmatprep.subr.bf16.mxu0 %v3504_v35  ;;  %v708_v29 = vpack.c.bf16 %v694_v36, %v693_v42  ;;  %v495_v24 = vpop.f32.mrf.mxu1 }
 0x154   :  { %v3626_v12 = vpop.eup %3625 }
 0x155   :  { %v707_v43 = vpack.c.bf16 %v692_v47, %v691_v34  ;;  %v673_v60 = vmul.f32 %v3626_v12, %v4107_v38  ;;  %v3505_v38 = vld [vmem:[#allocation6 + $0x158] ss:$24 sps:$4 sm:$0xff]   ;;  %v4191_v19 = vpop.f32.mrf.mxu1 }
 0x156   :  { %3254 = vmatpush3.bf16.msra.mxu0 %v3504_v35  ;;  %v3628_v14 = vpop.eup %3627 }
 0x157   :  { %3191 = vmatprep.mubr.bf16.mxu0 %v707_v43  ;;  %v671_v54 = vmul.f32 %v3628_v14, %v4113_v56  ;;  %v697_v21 = vmul.f32 %v3157_v20, %v673_v60  ;;  %3319 = vmatprep.subr.bf16.mxu0 %v3505_v38  ;;  %v3506_v56 = vld [vmem:[#allocation6 + $0x128] ss:$24 sps:$4 sm:$0xff]   ;;  %v4193_v30 = vpop.f32.mrf.mxu1 }
 0x158   :  { %v3630_v48 = vpop.eup %3629 }
 0x159   :  { %v674_v33 = vmul.f32 %v3630_v48, %v4118_v61  ;;  %3192 = vmatmul.mubr.bf16.gmra.mxu0 %v708_v29  ;;  %v695_v4 = vmul.f32 %v671_v54, %v492_v57  ;;  %v3507_v61 = vld [vmem:[#allocation8 + $0x78] sm:$0xff]   ;;  %v4195_v22 = vpop.f32.mrf.mxu1  ;;  %v2819_v48 = vmul.f32 -1.442695, %v4193_v30 }
 0x15a   :  { %v3632_v8 = vpop.eup %3631  ;;  %3279 = vmatprep.subr.bf16.mxu1 %v3507_v61 }
 0x15b   :  { %v672_v50 = vmul.f32 %v3632_v8, %v4124_v28  ;;  %v698_v5 = vmul.f32 %v3158_v11, %v674_v33  ;;  %v3508_v28 = vld [vmem:[#allocation6 + $0xf8] ss:$24 sps:$4 sm:$0xff]   ;;  %3280 = vmatpush3.bf16.msra.mxu1 %v3507_v61  ;;  %v4197_v16 = vpop.f32.mrf.mxu1  ;;  %v2822_v11 = vmul.f32 -1.442695, %v4195_v22  ;;  %v2821_v8 = vmul.f32 -1.442695, %v4191_v19 }
 0x15c   :  { %3281 = vmatprep.subr.bf16.mxu1 %v3510_v1  ;;  %v2820_v54 = vmul.f32 -1.442695, %v4197_v16  ;;  %3633 = vpow2.f32 %v2819_v48 }
 0x15d   :  { %v696_v0 = vmul.f32 %v672_v50, %v495_v24  ;;  %v710_v2 = vpack.c.bf16 %v698_v5, %v697_v21  ;;  %v4199_v9 = vpop.f32.mrf.mxu1  ;;  %3635 = vpow2.f32 %v2822_v11 }
 0x15e   :  { %3637 = vpow2.f32 %v2820_v54 }
 0x15f   :  { %v709_v27 = vpack.c.bf16 %v696_v0, %v695_v4  ;;  %3282 = vmatpush3.bf16.msra.mxu1 %v3510_v1  ;;  %v4201_v17 = vpop.f32.mrf.mxu1  ;;  %3639 = vpow2.f32 %v2821_v8 }
 0x160   :  { %3283 = vmatprep.subr.bf16.mxu1 %v3512_v18  ;;  %v2823_v0 = vmul.f32 -1.442695, %v4201_v17 }
 0x161   :  { %3195 = vmatprep.mubr.bf16.mxu0 %v709_v27  ;;  %v4203_v10 = vpop.f32.mrf.mxu1 }
 0x162   :  { %3196 = vmatmul.mubr.bf16.gmra.mxu0 %v710_v2  ;;  %v2826_v21 = vmul.f32 -1.442695, %v4203_v10  ;;  %3641 = vpow2.f32 %v2823_v0 }
 0x163   :  { %3255 = vmatprep.mubr.bf16.mxu0 %v3953_v7  ;;  %3284 = vmatpush3.bf16.msra.mxu1 %v3512_v18  ;;  %v4205_v35 = vpop.f32.mrf.mxu1 }
 0x164   :  { %3285 = vmatprep.subr.bf16.mxu1 %v3515_v3  ;;  %v2824_v2 = vmul.f32 -1.442695, %v4205_v35  ;;  %3643 = vpow2.f32 %v2826_v21 }
 0x165   :  { %v4207_v41 = vpop.f32.mrf.mxu1 }
 0x166   :  { %3645 = vpow2.f32 %v2824_v2 }
 0x167   :  { %3286 = vmatpush3.bf16.msra.mxu1 %v3515_v3  ;;  %v4209_v62 = vpop.f32.mrf.mxu1 }
 0x168   :  { %3287 = vmatprep.subr.bf16.mxu1 %v3517_v37 }
 0x169   :  { %v4213_v20 = vpop.f32.mrf.mxu1  ;;  %v3634_v18 = vpop.eup %3633 }
 0x16a   :  { %3256 = vmatmul.mubr.bf16.vlgmr.msra.gmra.mxu0 %v3957_v23  ;;  %v3636_v3 = vpop.eup %3635  ;;  %v1434_v11 = vadd.f32 1.0, %v3634_v18 }
 0x16b   :  { %3259 = vmatprep.mubr.bf16.mxu0 %v3959_v25  ;;  %3320 = vmatpush3.bf16.msra.mxu0 %v3505_v38  ;;  %v4219_v47 = vpop.f32.mrf.mxu1  ;;  %v2825_v38 = vmul.f32 -1.442695, %v4199_v9  ;;  %v1437_v54 = vadd.f32 1.0, %v3636_v3 }
 0x16c   :  { %3321 = vmatprep.subr.bf16.mxu0 %v3506_v56  ;;  %3288 = vmatpush3.bf16.msra.mxu1 %v3517_v37  ;;  %v3638_v37 = vpop.eup %3637 }
 0x16d   :  { %3289 = vmatprep.subr.bf16.mxu1 %v3518_v6  ;;  %v4225_v57 = vpop.f32.mrf.mxu1  ;;  %3647 = vpow2.f32 %v2825_v38  ;;  %v3640_v48 = vpop.eup %3639  ;;  %v1435_v0 = vadd.f32 1.0, %v3638_v37 }
 0x16e   :  { %v1436_v21 = vadd.f32 1.0, %v3640_v48  ;;  %v2833_v37 = vmul.f32 -1.442695, %v4225_v57 }
 0x16f   :  { %3322 = vmatpush3.bf16.msra.mxu0 %v3506_v56  ;;  %v4231_v29 = vpop.f32.mrf.mxu1 }
 0x170   :  { %3323 = vmatprep.subr.bf16.mxu0 %v3508_v28  ;;  %3290 = vmatpush3.bf16.msra.mxu1 %v3518_v6  ;;  %v2829_v6 = vmul.f32 -1.442695, %v4207_v41 }
 0x171   :  { %3291 = vmatprep.subr.bf16.mxu1 %v3519_v53  ;;  %v4239_v60 = vpop.f32.mrf.mxu1 }
 0x172   :  { %3260 = vmatmul.mubr.bf16.gmra.mxu0 %v3963_v31  ;;  %v2834_v18 = vmul.f32 -1.442695, %v4239_v60 }
 0x173   :  { %3263 = vmatprep.mubr.bf16.mxu0 %v3965_v32  ;;  %3324 = vmatpush3.bf16.msra.mxu0 %v3508_v28  ;;  %v4245_v24 = vpop.f32.mrf.mxu1 }
 0x174   :  { %3325 = vmatprep.subr.bf16.mxu0 %v3509_v49  ;;  %3292 = vmatpush3.bf16.msra.mxu1 %v3519_v53  ;;  %v2832_v3 = vmul.f32 -1.442695, %v4245_v24 }
 0x175   :  { %3293 = vmatprep.subr.bf16.mxu1 %v3520_v58  ;;  %v4255_v56 = vpop.f32.mrf.mxu1 }
 0x177   :  { %3326 = vmatpush3.bf16.msra.mxu0 %v3509_v49  ;;  %v4261_v49 = vpop.f32.mrf.mxu1 }
 0x178   :  { %3327 = vmatprep.subr.bf16.mxu0 %v3511_v59  ;;  %3294 = vmatpush3.bf16.msra.mxu1 %v3520_v58 }
 0x179   :  { %3359 = vmatprep.subr.bf16.mxu1 %v4183_v15  ;;  %v4271_v53 = vpop.f32.mrf.mxu1 }
 0x17a   :  { %3264 = vmatmul.mubr.bf16.gmra.mxu0 %v3971_v39 }
 0x17b   :  { %3267 = vmatprep.mubr.bf16.mxu0 %v3973_v40  ;;  %3328 = vmatpush3.bf16.msra.mxu0 %v3511_v59  ;;  %v2827_v59 = vmul.f32 -1.442695, %v4209_v62  ;;  %v4277_v2 = vpop.f32.mrf.mxu1 }
 0x17c   :  { %3329 = vmatprep.subr.bf16.mxu0 %v3513_v26 }
 0x17d   :  { %3649 = vpow2.f32 %v2827_v59 }
 0x17f   :  { %3330 = vmatpush3.bf16.msra.mxu0 %v3513_v26  ;;  %v2830_v26 = vmul.f32 -1.442695, %v4213_v20 }
 0x180   :  { %3331 = vmatprep.subr.bf16.mxu0 %v3514_v13 }
 0x181   :  { %3651 = vpow2.f32 %v2830_v26 }
 0x182   :  { %3268 = vmatmul.mubr.bf16.gmra.mxu0 %v3979_v45 }
 0x183   :  { %3271 = vmatprep.mubr.bf16.mxu0 %v3981_v46  ;;  %3332 = vmatpush3.bf16.msra.mxu0 %v3514_v13 }
 0x184   :  { %3333 = vmatprep.subr.bf16.mxu0 %v3516_v63 }
 0x187   :  { %3334 = vmatpush3.bf16.msra.mxu0 %v3516_v63  ;;  %v2828_v63 = vmul.f32 -1.442695, %v4219_v47 }
 0x189   :  { %3653 = vpow2.f32 %v2828_v63 }
 0x18a   :  { %3272 = vmatmul.mubr.bf16.gmra.mxu0 %v3987_v51  ;;  %3655 = vpow2.f32 %v2829_v6  ;;  %v4287_v6 = vpop.f32.mrf.mxu1 }
 0x18b   :  { %3275 = vmatprep.mubr.bf16.mxu0 %v3989_v52  ;;  %3657 = vrcp.f32 %v1434_v11 }
 0x18c   :  { %3659 = vrcp.f32 %v1437_v54 }
 0x18d   :  { %3661 = vrcp.f32 %v1435_v0  ;;  %v4291_v0 = vpop.f32.mrf.mxu1 }
 0x18e   :  { %3663 = vrcp.f32 %v1436_v21  ;;  %v2835_v21 = vmul.f32 -1.442695, %v4261_v49 }
 0x192   :  { %3276 = vmatmul.mubr.bf16.gmra.mxu0 %v3995_v55 }
 0x193   :  { %3335 = vmatprep.mubr.bf16.mxu0 %v3953_v7 }
 0x19a   :  { %3336 = vmatmul.mubr.bf16.vlgmr.msra.gmra.mxu0 %v3957_v23 }
 0x19b   :  { %3339 = vmatprep.mubr.bf16.mxu0 %v3959_v25 }
 0x1a2   :  { %3340 = vmatmul.mubr.bf16.gmra.mxu0 %v3963_v31 }
 0x1a3   :  { %3343 = vmatprep.mubr.bf16.mxu0 %v3965_v32 }
 0x1aa   :  { %3344 = vmatmul.mubr.bf16.gmra.mxu0 %v3971_v39 }
 0x1ab   :  { %3347 = vmatprep.mubr.bf16.mxu0 %v3973_v40 }
 0x1b2   :  { %3348 = vmatmul.mubr.bf16.gmra.mxu0 %v3979_v45 }
 0x1b3   :  { %3351 = vmatprep.mubr.bf16.mxu0 %v3981_v46 }
 0x1ba   :  { %3352 = vmatmul.mubr.bf16.gmra.mxu0 %v3987_v51 }
 0x1bb   :  { %3355 = vmatprep.mubr.bf16.mxu0 %v3989_v52 }
 0x1c2   :  { %3356 = vmatmul.mubr.bf16.gmra.mxu0 %v3995_v55 }
 0x1f8   :  { %v4211_v44 = vpop.f32.mrf.mxu0 }
 0x1f9   :  { %4550 = vst [vmem:[#allocation13_spill] sm:$0xff] %v4211_v44 }
 0x1fa   :  { %v4215_v34 = vpop.f32.mrf.mxu0 }
 0x1fb   :  { %4551 = vst [vmem:[#allocation14_spill] sm:$0xff] %v4215_v34 }
 0x1fc   :  { %v4217_v36 = vpop.f32.mrf.mxu0 }
 0x1fd   :  { %4552 = vst [vmem:[#allocation15_spill] sm:$0xff] %v4217_v36 }
 0x1fe   :  { %v4221_v42 = vpop.f32.mrf.mxu0 }
 0x1ff   :  { %4553 = vst [vmem:[#allocation16_spill] sm:$0xff] %v4221_v42 }
 0x200   :  { %v4223_v43 = vpop.f32.mrf.mxu0 }
 0x201   :  { %4554 = vst [vmem:[#allocation17_spill] sm:$0xff] %v4223_v43 }
 0x202   :  { %v4227_v12 = vpop.f32.mrf.mxu0 }
 0x203   :  { %4555 = vst [vmem:[#allocation18_spill] sm:$0xff] %v4227_v12 }
 0x204   :  { %v4229_v14 = vpop.f32.mrf.mxu0 }
 0x205   :  { %4556 = vst [vmem:[#allocation19_spill] sm:$0xff] %v4229_v14  ;;  %v2841_v14 = vmul.f32 -1.442695, %v4287_v6 }
 0x206   :  { %v4234_v33 = vpop.f32.mrf.mxu0 }
 0x207   :  { %4557 = vst [vmem:[#allocation20_spill] sm:$0xff] %v4234_v33 }
 0x209   :  { %v4241_v50 = vpop.f32.mrf.mxu0 }
 0x20a   :  { %4558 = vst [vmem:[#allocation21_spill] sm:$0xff] %v4241_v50 }
 0x20b   :  { %v4243_v5 = vpop.f32.mrf.mxu0 }
 0x20c   :  { %4559 = vst [vmem:[#allocation22_spill] sm:$0xff] %v4243_v5 }
 0x20d   :  { %v4247_v4 = vpop.f32.mrf.mxu0 }
 0x20e   :  { %4560 = vst [vmem:[#allocation23_spill] sm:$0xff] %v4247_v4 }
 0x20f   :  { %v4251_v27 = vpop.f32.mrf.mxu0 }
 0x210   :  { %4561 = vst [vmem:[#allocation24_spill] sm:$0xff] %v4251_v27 }
 0x211   :  { %v4257_v61 = vpop.f32.mrf.mxu0 }
 0x212   :  { %4562 = vst [vmem:[#allocation25_spill] sm:$0xff] %v4257_v61 }
 0x213   :  { %v4259_v28 = vpop.f32.mrf.mxu0 }
 0x214   :  { %4563 = vst [vmem:[#allocation26_spill] sm:$0xff] %v4259_v28 }
 0x215   :  { %v4263_v1 = vpop.f32.mrf.mxu0 }
 0x216   :  { %4564 = vst [vmem:[#allocation27_spill] sm:$0xff] %v4263_v1  ;;  %v3642_v1 = vpop.eup %3641 }
 0x217   :  { %v4267_v13 = vpop.f32.mrf.mxu0  ;;  %v3644_v26 = vpop.eup %3643  ;;  %v1438_v11 = vadd.f32 1.0, %v3642_v1  ;;  %v2838_v1 = vmul.f32 -1.442695, %v4271_v53 }
 0x218   :  { %4565 = vst [vmem:[#allocation28_spill] sm:$0xff] %v4267_v13  ;;  %v2831_v13 = vmul.f32 -1.442695, %v4231_v29  ;;  %v3646_v63 = vpop.eup %3645 }
 0x219   :  { %v4273_v58 = vpop.f32.mrf.mxu0  ;;  %v3648_v48 = vpop.eup %3647 }
 0x21a   :  { %4566 = vst [vmem:[#allocation29_spill] sm:$0xff] %v4273_v58  ;;  %3665 = vpow2.f32 %v2831_v13  ;;  %v3650_v28 = vpop.eup %3649 }
 0x21b   :  { %v4275_v8 = vpop.f32.mrf.mxu0  ;;  %3667 = vpow2.f32 %v2834_v18  ;;  %v3652_v18 = vpop.eup %3651 }
 0x21c   :  { %4567 = vst [vmem:[#allocation30_spill] sm:$0xff] %v4275_v8  ;;  %v1439_v8 = vadd.f32 1.0, %v3646_v63  ;;  %3669 = vpow2.f32 %v2832_v3  ;;  %v3654_v3 = vpop.eup %3653  ;;  %v2837_v63 = vmul.f32 -1.442695, %v4255_v56 }
 0x21d   :  { %v4279_v38 = vpop.f32.mrf.mxu0  ;;  %3671 = vpow2.f32 %v2833_v37  ;;  %v4301_v37 = vpop.f32.mrf.mxu1  ;;  %v1443_v27 = vadd.f32 1.0, %v3654_v3 }
 0x21e   :  { %4568 = vst [vmem:[#allocation31_spill] sm:$0xff] %v4279_v38  ;;  %v1441_v38 = vadd.f32 1.0, %v3644_v26  ;;  %3673 = vrcp.f32 %v1438_v11  ;;  %v2836_v26 = vmul.f32 -1.442695, %v4277_v2  ;;  %v3656_v11 = vpop.eup %3655 }
 0x21f   :  { %v4283_v59 = vpop.f32.mrf.mxu0  ;;  %v1444_v4 = vadd.f32 1.0, %v3656_v11 }
 0x220   :  { %4569 = vst [vmem:[#allocation32_spill] sm:$0xff] %v4283_v59  ;;  %v1440_v59 = vadd.f32 1.0, %v3648_v48  ;;  %3675 = vrcp.f32 %v1441_v38  ;;  %v3658_v38 = vpop.eup %3657 }
 0x221   :  { %3677 = vrcp.f32 %v1439_v8 }
 0x222   :  { %v4289_v54 = vpop.f32.mrf.mxu0  ;;  %3679 = vrcp.f32 %v1440_v59  ;;  %v4305_v59 = vpop.f32.mrf.mxu1 }
 0x223   :  { %4570 = vst [vmem:[#allocation33_spill] sm:$0xff] %v4289_v54  ;;  %3681 = vpow2.f32 %v2835_v21  ;;  %v1445_v54 = vadd.f32 1.0, %v3652_v18  ;;  %v2842_v21 = vmul.f32 -1.442695, %v4301_v37 }
 0x224   :  { %v4293_v58 = vpop.f32.mrf.mxu0  ;;  %3683 = vpow2.f32 %v2838_v1 }
 0x225   :  { %4571 = vst [vmem:[#allocation34_spill] sm:$0xff] %v4293_v58  ;;  %v1442_v58 = vadd.f32 1.0, %v3650_v28  ;;  %3685 = vpow2.f32 %v2836_v26  ;;  %v1506_v26 = vmul.f32 %v3658_v38, %v4193_v30 }
 0x226   :  { %v4297_v13 = vpop.f32.mrf.mxu0  ;;  %3687 = vpow2.f32 %v2837_v63  ;;  %v2840_v63 = vmul.f32 -1.442695, %v4305_v59 }
 0x227   :  { %4572 = vst [vmem:[#allocation35_spill] sm:$0xff] %v4297_v13  ;;  %v3660_v13 = vpop.eup %3659  ;;  %3689 = vrcp.f32 %v1442_v58 }
 0x228   :  { %v4303_v48 = vpop.f32.mrf.mxu0  ;;  %v3662_v8 = vpop.eup %3661  ;;  %v1509_v28 = vmul.f32 %v3660_v13, %v4195_v22  ;;  %3691 = vrcp.f32 %v1445_v54 }
 0x229   :  { %4573 = vst [vmem:[#allocation36_spill] sm:$0xff] %v4303_v48  ;;  %v3664_v50 = vpop.eup %3663  ;;  %v2839_v48 = vmul.f32 -1.442695, %v4291_v0  ;;  %v1507_v3 = vmul.f32 %v3662_v8, %v4197_v16  ;;  %3693 = vrcp.f32 %v1443_v27 }
 0x22a   :  { %v3257_v61 = vpop.f32.mrf.mxu0  ;;  %v3666_v33 = vpop.eup %3665  ;;  %v1508_v58 = vmul.f32 %v3664_v50, %v4191_v19  ;;  %3695 = vrcp.f32 %v1444_v4 }
 0x22b   :  { %v3668_v18 = vpop.eup %3667  ;;  %v1446_v13 = vadd.f32 1.0, %v3666_v33  ;;  %3697 = vpow2.f32 %v2839_v48 }
 0x22c   :  { %v1267_v5 = vpop.f32.mrf.mxu0  ;;  %v3670_v11 = vpop.eup %3669  ;;  %v1449_v30 = vadd.f32 1.0, %v3668_v18  ;;  %3699 = vpow2.f32 %v2842_v21  ;;  %v1532_v16 = vmul.f32 %v3257_v61, %v1508_v58  ;;  %v3523_v18 = vld [vmem:[#allocation6 + $0x104] ss:$24 sps:$4 sm:$0xff]  }
 0x22d   :  { %v3672_v54 = vpop.eup %3671  ;;  %v1530_v43 = vmul.f32 %v1506_v26, %v1267_v5  ;;  %v1447_v8 = vadd.f32 1.0, %v3670_v11  ;;  %3701 = vpow2.f32 %v2840_v63 }
 0x22e   :  { %v3258_v1 = vpop.f32.mrf.mxu0  ;;  %v3674_v36 = vpop.eup %3673  ;;  %v1448_v50 = vadd.f32 1.0, %v3672_v54  ;;  %3703 = vpow2.f32 %v2841_v14 }
 0x22f   :  { %v1533_v12 = vmul.f32 %v3258_v1, %v1509_v28  ;;  %v3676_v38 = vpop.eup %3675  ;;  %v3522_v1 = vld [vmem:[#allocation6 + $0x134] ss:$24 sps:$4 sm:$0xff]   ;;  %3705 = vrcp.f32 %v1446_v13  ;;  %v1510_v21 = vmul.f32 %v3674_v36, %v4201_v17 }
 0x230   :  { %v1270_v22 = vpop.f32.mrf.mxu0  ;;  %v3678_v19 = vpop.eup %3677  ;;  %v1513_v5 = vmul.f32 %v3676_v38, %v4203_v10  ;;  %3707 = vrcp.f32 %v1449_v30  ;;  %v3524_v30 = vld [vmem:[#allocation6 + $0xd4] ss:$24 sps:$4 sm:$0xff]  }
 0x231   :  { %v1531_v42 = vmul.f32 %v1507_v3, %v1270_v22  ;;  %v1555_v4 = vpack.c.bf16 %v1533_v12, %v1532_v16  ;;  %v3680_v44 = vpop.eup %3679  ;;  %3709 = vrcp.f32 %v1447_v8 }
 0x232   :  { %v3261_v27 = vpop.f32.mrf.mxu0  ;;  %v3682_v33 = vpop.eup %3681  ;;  %v1512_v12 = vmul.f32 %v3680_v44, %v4199_v9  ;;  %3711 = vrcp.f32 %v1448_v50 }
 0x233   :  { %v1554_v34 = vpack.c.bf16 %v1531_v42, %v1530_v43  ;;  %v3684_v61 = vpop.eup %3683  ;;  %v1511_v42 = vmul.f32 %v3678_v19, %v4205_v35  ;;  %v1450_v26 = vadd.f32 1.0, %v3682_v33 }
 0x234   :  { %v1283_v28 = vpop.f32.mrf.mxu0  ;;  %v3686_v43 = vpop.eup %3685  ;;  %v1453_v58 = vadd.f32 1.0, %v3684_v61  ;;  %v1536_v17 = vmul.f32 %v3261_v27, %v1512_v12 }
 0x235   :  { %3295 = vmatprep.mubr.bf16.mxu1 %v1554_v34  ;;  %v3688_v10 = vpop.eup %3687  ;;  %v1534_v3 = vmul.f32 %v1510_v21, %v1283_v28  ;;  %v1451_v22 = vadd.f32 1.0, %v3686_v43  ;;  %3713 = vrcp.f32 %v1450_v26 }
 0x236   :  { %v3262_v48 = vpop.f32.mrf.mxu0  ;;  %3296 = vmatmul.mubr.bf16.vlgmr.msra.gmra.mxu1 %v1555_v4  ;;  %v3690_v11 = vpop.eup %3689  ;;  %v1452_v13 = vadd.f32 1.0, %v3688_v10  ;;  %3715 = vrcp.f32 %v1453_v58 }
 0x237   :  { %3360 = vmatpush3.bf16.msra.mxu1 %v4183_v15  ;;  %v1537_v14 = vmul.f32 %v3262_v48, %v1513_v5  ;;  %v3692_v35 = vpop.eup %3691  ;;  %v1514_v50 = vmul.f32 %v3690_v11, %v4209_v62  ;;  %3717 = vrcp.f32 %v1451_v22  ;;  %v3525_v48 = vld [vmem:[#allocation6 + $0xa4] ss:$24 sps:$4 sm:$0xff]  }
 0x238   :  { %v1286_v34 = vpop.f32.mrf.mxu0  ;;  %3361 = vmatprep.subr.bf16.mxu1 %v3522_v1  ;;  %v3694_v15 = vpop.eup %3693  ;;  %v1517_v8 = vmul.f32 %v3692_v35, %v4213_v20  ;;  %3719 = vrcp.f32 %v1452_v13  ;;  %v3527_v13 = vld [vmem:[#allocation6 + $0x44] ss:$24 sps:$4 sm:$0xff]  }
 0x239   :  { %v1535_v63 = vmul.f32 %v1511_v42, %v1286_v34  ;;  %v1557_v9 = vpack.c.bf16 %v1537_v14, %v1536_v17  ;;  %v3696_v16 = vpop.eup %3695  ;;  %v1515_v4 = vmul.f32 %v3694_v15, %v4219_v47 }
 0x23a   :  { %v3265_v36 = vpop.f32.mrf.mxu0  ;;  %v3698_v38 = vpop.eup %3697 }
 0x23b   :  { %v1556_v54 = vpack.c.bf16 %v1535_v63, %v1534_v3  ;;  %3362 = vmatpush3.bf16.msra.mxu1 %v3522_v1  ;;  %v3700_v27 = vpop.eup %3699  ;;  %v1516_v1 = vmul.f32 %v3696_v16, %v4207_v41  ;;  %v1454_v20 = vadd.f32 1.0, %v3698_v38  ;;  %v3526_v63 = vld [vmem:[#allocation6 + $0x74] ss:$24 sps:$4 sm:$0xff]  }
 0x23c   :  { %v1299_v44 = vpop.f32.mrf.mxu0  ;;  %3363 = vmatprep.subr.bf16.mxu1 %v3523_v18  ;;  %v3702_v28 = vpop.eup %3701  ;;  %v1457_v12 = vadd.f32 1.0, %v3700_v27  ;;  %v3528_v27 = vld [vmem:[#allocation6 + $0x14] ss:$24 sps:$4 sm:$0xff]  }
 0x23d   :  { %3299 = vmatprep.mubr.bf16.mxu1 %v1556_v54  ;;  %v3704_v61 = vpop.eup %3703  ;;  %v1538_v21 = vmul.f32 %v1514_v50, %v1299_v44  ;;  %v1540_v14 = vmul.f32 %v3265_v36, %v1516_v1  ;;  %v1455_v47 = vadd.f32 1.0, %v3702_v28  ;;  %3721 = vrcp.f32 %v1454_v20 }
 0x23e   :  { %v3266_v19 = vpop.f32.mrf.mxu0  ;;  %3300 = vmatmul.mubr.bf16.gmra.mxu1 %v1557_v9  ;;  %v3706_v43 = vpop.eup %3705  ;;  %v1456_v26 = vadd.f32 1.0, %v3704_v61  ;;  %3723 = vrcp.f32 %v1457_v12 }
 0x23f   :  { %3364 = vmatpush3.bf16.msra.mxu1 %v3523_v18  ;;  %v1541_v33 = vmul.f32 %v3266_v19, %v1517_v8  ;;  %v3708_v34 = vpop.eup %3707  ;;  %v1518_v36 = vmul.f32 %v3706_v43, %v4231_v29  ;;  %3725 = vrcp.f32 %v1455_v47 }
 0x240   :  { %v1302_v5 = vpop.f32.mrf.mxu0  ;;  %3365 = vmatprep.subr.bf16.mxu1 %v3524_v30  ;;  %v3710_v18 = vpop.eup %3709  ;;  %v1521_v58 = vmul.f32 %v3708_v34, %v4239_v60  ;;  %3727 = vrcp.f32 %v1456_v26 }
 0x241   :  { %v1539_v42 = vmul.f32 %v1515_v4, %v1302_v5  ;;  %v1559_v41 = vpack.c.bf16 %v1541_v33, %v1540_v14  ;;  %v3712_v11 = vpop.eup %3711  ;;  %v1519_v35 = vmul.f32 %v3710_v18, %v4245_v24 }
 0x242   :  { %v3269_v62 = vpop.f32.mrf.mxu0  ;;  %v1520_v22 = vmul.f32 %v3712_v11, %v4225_v57 }
 0x243   :  { %v1558_v10 = vpack.c.bf16 %v1539_v42, %v1538_v21  ;;  %3366 = vmatpush3.bf16.msra.mxu1 %v3524_v30  ;;  %v3714_v30 = vpop.eup %3713 }
 0x244   :  { %v1315_v3 = vpop.f32.mrf.mxu0  ;;  %3367 = vmatprep.subr.bf16.mxu1 %v3525_v48  ;;  %v1544_v60 = vmul.f32 %v3269_v62, %v1520_v22  ;;  %v3716_v38 = vpop.eup %3715  ;;  %v1522_v28 = vmul.f32 %v3714_v30, %v4261_v49 }
 0x245   :  { %3303 = vmatprep.mubr.bf16.mxu1 %v1558_v10  ;;  %v1542_v9 = vmul.f32 %v1518_v36, %v1315_v3  ;;  %v3718_v29 = vpop.eup %3717  ;;  %v1525_v57 = vmul.f32 %v3716_v38, %v4271_v53 }
 0x246   :  { %v3270_v17 = vpop.f32.mrf.mxu0  ;;  %3304 = vmatmul.mubr.bf16.gmra.mxu1 %v1559_v41  ;;  %v3720_v50 = vpop.eup %3719  ;;  %v1523_v1 = vmul.f32 %v3718_v29, %v4277_v2 }
 0x247   :  { %3368 = vmatpush3.bf16.msra.mxu1 %v3525_v48  ;;  %v1545_v54 = vmul.f32 %v3270_v17, %v1521_v58  ;;  %v1524_v33 = vmul.f32 %v3720_v50, %v4255_v56 }
 0x248   :  { %v1318_v15 = vpop.f32.mrf.mxu0  ;;  %3369 = vmatprep.subr.bf16.mxu1 %v3526_v63 }
 0x249   :  { %v1543_v44 = vmul.f32 %v1519_v35, %v1318_v15  ;;  %v1561_v19 = vpack.c.bf16 %v1545_v54, %v1544_v60 }
 0x24a   :  { %v3273_v16 = vpop.f32.mrf.mxu0  ;;  %v3722_v21 = vpop.eup %3721 }
 0x24b   :  { %v1560_v8 = vpack.c.bf16 %v1543_v44, %v1542_v9  ;;  %3370 = vmatpush3.bf16.msra.mxu1 %v3526_v63  ;;  %v1548_v42 = vmul.f32 %v3273_v16, %v1524_v33  ;;  %v3724_v12 = vpop.eup %3723  ;;  %v1526_v56 = vmul.f32 %v3722_v21, %v4291_v0 }
 0x24c   :  { %v1331_v24 = vpop.f32.mrf.mxu0  ;;  %3371 = vmatprep.subr.bf16.mxu1 %v3527_v13  ;;  %v3726_v53 = vpop.eup %3725  ;;  %v1529_v2 = vmul.f32 %v3724_v12, %v4301_v37 }
 0x24d   :  { %3307 = vmatprep.mubr.bf16.mxu1 %v1560_v8  ;;  %v1546_v61 = vmul.f32 %v1522_v28, %v1331_v24  ;;  %v3728_v49 = vpop.eup %3727  ;;  %v1527_v10 = vmul.f32 %v3726_v53, %v4305_v59 }
 0x24e   :  { %v3274_v4 = vpop.f32.mrf.mxu0  ;;  %3308 = vmatmul.mubr.bf16.gmra.mxu1 %v1561_v19  ;;  %v1528_v18 = vmul.f32 %v3728_v49, %v4287_v6 }
 0x24f   :  { %3372 = vmatpush3.bf16.msra.mxu1 %v3527_v13  ;;  %v1549_v5 = vmul.f32 %v3274_v4, %v1525_v57 }
 0x250   :  { %v1334_v48 = vpop.f32.mrf.mxu0  ;;  %3373 = vmatprep.subr.bf16.mxu1 %v3528_v27 }
 0x251   :  { %v1547_v20 = vmul.f32 %v1523_v1, %v1334_v48  ;;  %v1563_v62 = vpack.c.bf16 %v1549_v5, %v1548_v42 }
 0x252   :  { %v3277_v43 = vpop.f32.mrf.mxu0 }
 0x253   :  { %v1562_v14 = vpack.c.bf16 %v1547_v20, %v1546_v61  ;;  %3374 = vmatpush3.bf16.msra.mxu1 %v3528_v27  ;;  %v1552_v11 = vmul.f32 %v3277_v43, %v1528_v18 }
 0x254   :  { %v1347_v34 = vpop.f32.mrf.mxu0 }
 0x255   :  { %3311 = vmatprep.mubr.bf16.mxu1 %v1562_v14  ;;  %v1550_v3 = vmul.f32 %v1526_v56, %v1347_v34 }
 0x256   :  { %v3278_v47 = vpop.f32.mrf.mxu0  ;;  %3312 = vmatmul.mubr.bf16.gmra.mxu1 %v1563_v62 }
 0x257   :  { %v1553_v26 = vmul.f32 %v3278_v47, %v1529_v2 }
 0x258   :  { %v1350_v41 = vpop.f32.mrf.mxu0 }
 0x259   :  { %v1551_v63 = vmul.f32 %v1527_v10, %v1350_v41  ;;  %v1565_v17 = vpack.c.bf16 %v1553_v26, %v1552_v11 }
 0x25b   :  { %v1564_v58 = vpack.c.bf16 %v1551_v63, %v1550_v3 }
 0x25d   :  { %3315 = vmatprep.mubr.bf16.mxu1 %v1564_v58 }
 0x25e   :  { %3316 = vmatmul.mubr.bf16.gmra.mxu1 %v1565_v17 }
 0x25f   :  { %3375 = vmatprep.mubr.bf16.mxu1 %v3953_v7  ;;  %v3529_v7 = vld [vmem:[#allocation8 + $0xb8] sm:$0xff]  }
 0x260   :  { %3399 = vmatprep.subr.bf16.mxu0 %v3529_v7  ;;  %3439 = vmatprep.subr.bf16.mxu1 %v3529_v7 }
 0x261   :  { %3400 = vmatpush3.bf16.msra.mxu0 %v3529_v7 }
 0x266   :  { %3376 = vmatmul.mubr.bf16.vlgmr.msra.gmra.mxu1 %v3957_v23  ;;  %v3530_v23 = vld [vmem:[#allocation8 + $0xb0] sm:$0xff]  }
 0x267   :  { %3379 = vmatprep.mubr.bf16.mxu1 %v3959_v25  ;;  %3447 = vmatpush3.bf16.msra.mxu1 %v3529_v7  ;;  %v3531_v25 = vld [vmem:[#allocation8 + $0xa8] sm:$0xff]  }
 0x268   :  { %3401 = vmatprep.subr.bf16.mxu0 %v3530_v23  ;;  %3440 = vmatprep.subr.bf16.mxu1 %v3530_v23 }
 0x269   :  { %3402 = vmatpush3.bf16.msra.mxu0 %v3530_v23 }
 0x26a   :  { %3403 = vmatprep.subr.bf16.mxu0 %v3531_v25 }
 0x26b   :  { %3448 = vmatpush3.bf16.msra.mxu1 %v3530_v23 }
 0x26c   :  { %3441 = vmatprep.subr.bf16.mxu1 %v3531_v25 }
 0x26d   :  { %3404 = vmatpush3.bf16.msra.mxu0 %v3531_v25 }
 0x26e   :  { %3380 = vmatmul.mubr.bf16.gmra.mxu1 %v3963_v31  ;;  %v3532_v31 = vld [vmem:[#allocation8 + $0xa0] sm:$0xff]  }
 0x26f   :  { %3383 = vmatprep.mubr.bf16.mxu1 %v3965_v32  ;;  %3449 = vmatpush3.bf16.msra.mxu1 %v3531_v25  ;;  %v3533_v32 = vld [vmem:[#allocation8 + $0x98] sm:$0xff]  }
 0x270   :  { %3405 = vmatprep.subr.bf16.mxu0 %v3532_v31  ;;  %3442 = vmatprep.subr.bf16.mxu1 %v3532_v31 }
 0x271   :  { %3406 = vmatpush3.bf16.msra.mxu0 %v3532_v31 }
 0x272   :  { %3407 = vmatprep.subr.bf16.mxu0 %v3533_v32 }
 0x273   :  { %3450 = vmatpush3.bf16.msra.mxu1 %v3532_v31 }
 0x274   :  { %3443 = vmatprep.subr.bf16.mxu1 %v3533_v32 }
 0x275   :  { %3408 = vmatpush3.bf16.msra.mxu0 %v3533_v32 }
 0x276   :  { %3384 = vmatmul.mubr.bf16.gmra.mxu1 %v3971_v39  ;;  %v3534_v39 = vld [vmem:[#allocation8 + $0x90] sm:$0xff]  }
 0x277   :  { %3387 = vmatprep.mubr.bf16.mxu1 %v3973_v40  ;;  %3451 = vmatpush3.bf16.msra.mxu1 %v3533_v32  ;;  %v3535_v40 = vld [vmem:[#allocation8 + $0x88] sm:$0xff]  }
 0x278   :  { %3409 = vmatprep.subr.bf16.mxu0 %v3534_v39  ;;  %3444 = vmatprep.subr.bf16.mxu1 %v3534_v39 }
 0x279   :  { %3410 = vmatpush3.bf16.msra.mxu0 %v3534_v39 }
 0x27a   :  { %3411 = vmatprep.subr.bf16.mxu0 %v3535_v40 }
 0x27b   :  { %3452 = vmatpush3.bf16.msra.mxu1 %v3534_v39 }
 0x27c   :  { %3445 = vmatprep.subr.bf16.mxu1 %v3535_v40 }
 0x27d   :  { %3412 = vmatpush3.bf16.msra.mxu0 %v3535_v40 }
 0x27e   :  { %3388 = vmatmul.mubr.bf16.gmra.mxu1 %v3979_v45  ;;  %v3536_v45 = vld [vmem:[#allocation8 + $0x80] sm:$0xff]  }
 0x27f   :  { %3391 = vmatprep.mubr.bf16.mxu1 %v3981_v46  ;;  %3453 = vmatpush3.bf16.msra.mxu1 %v3535_v40  ;;  %v4348_v46 = vpop.f32.mrf.mxu0 }
 0x280   :  { %3413 = vmatprep.subr.bf16.mxu0 %v3536_v45  ;;  %3446 = vmatprep.subr.bf16.mxu1 %v3536_v45  ;;  %v2869_v27 = vmul.f32 -1.442695, %v4348_v46 }
 0x281   :  { %3414 = vmatpush3.bf16.msra.mxu0 %v3536_v45 }
 0x283   :  { %3454 = vmatpush3.bf16.msra.mxu1 %v3536_v45 }
 0x286   :  { %3392 = vmatmul.mubr.bf16.gmra.mxu1 %v3987_v51  ;;  %v4350_v51 = vpop.f32.mrf.mxu0 }
 0x287   :  { %3395 = vmatprep.mubr.bf16.mxu1 %v3989_v52  ;;  %v2867_v8 = vmul.f32 -1.442695, %v4350_v51 }
 0x288   :  { %v4352_v52 = vpop.f32.mrf.mxu0 }
 0x289   :  { %v2870_v29 = vmul.f32 -1.442695, %v4352_v52  ;;  %3729 = vpow2.f32 %v2867_v8 }
 0x28b   :  { %3731 = vpow2.f32 %v2870_v29 }
 0x28e   :  { %3396 = vmatmul.mubr.bf16.gmra.mxu1 %v3995_v55  ;;  %v4354_v55 = vpop.f32.mrf.mxu0 }
 0x28f   :  { %v2868_v24 = vmul.f32 -1.442695, %v4354_v55 }
 0x290   :  { %v4356_v6 = vpop.f32.mrf.mxu0 }
 0x291   :  { %3733 = vpow2.f32 %v2868_v24  ;;  %v2873_v20 = vmul.f32 -1.442695, %v4356_v6 }
 0x292   :  { %v4358_v0 = vpop.f32.mrf.mxu0  ;;  %3735 = vpow2.f32 %v2869_v27 }
 0x293   :  { %v2871_v33 = vmul.f32 -1.442695, %v4358_v0 }
 0x294   :  { %v4360_v37 = vpop.f32.mrf.mxu0 }
 0x295   :  { %v2874_v5 = vmul.f32 -1.442695, %v4360_v37  ;;  %3737 = vpow2.f32 %v2871_v33 }
 0x296   :  { %v4362_v59 = vpop.f32.mrf.mxu0  ;;  %v3730_v62 = vpop.eup %3729 }
 0x297   :  { %v2872_v61 = vmul.f32 -1.442695, %v4362_v59  ;;  %3739 = vpow2.f32 %v2874_v5  ;;  %v2289_v3 = vadd.f32 1.0, %v3730_v62 }
 0x298   :  { %v4364_v36 = vpop.f32.mrf.mxu0  ;;  %v3732_v2 = vpop.eup %3731 }
 0x299   :  { %3741 = vpow2.f32 %v2872_v61  ;;  %v2877_v10 = vmul.f32 -1.442695, %v4364_v36  ;;  %v2292_v63 = vadd.f32 1.0, %v3732_v2 }
 0x29a   :  { %v4366_v35 = vpop.f32.mrf.mxu0  ;;  %3743 = vpow2.f32 %v2873_v20 }
 0x29b   :  { %v2875_v53 = vmul.f32 -1.442695, %v4366_v35 }
 0x29c   :  { %v4368_v22 = vpop.f32.mrf.mxu0 }
 0x29d   :  { %v2878_v34 = vmul.f32 -1.442695, %v4368_v22  ;;  %3745 = vpow2.f32 %v2875_v53 }
 0x29e   :  { %v4372_v15 = vpop.f32.mrf.mxu0  ;;  %v3734_v56 = vpop.eup %3733 }
 0x29f   :  { %v2876_v47 = vmul.f32 -1.442695, %v4372_v15  ;;  %v3736_v41 = vpop.eup %3735  ;;  %3747 = vpow2.f32 %v2878_v34  ;;  %v2290_v58 = vadd.f32 1.0, %v3734_v56 }
 0x2a0   :  { %v4378_v44 = vpop.f32.mrf.mxu0  ;;  %v2291_v17 = vadd.f32 1.0, %v3736_v41 }
 0x2a1   :  { %3749 = vpow2.f32 %v2876_v47  ;;  %v2881_v29 = vmul.f32 -1.442695, %v4378_v44 }
 0x2a2   :  { %v4384_v16 = vpop.f32.mrf.mxu0  ;;  %3751 = vpow2.f32 %v2877_v10  ;;  %v3738_v31 = vpop.eup %3737 }
 0x2a3   :  { %3753 = vrcp.f32 %v2289_v3  ;;  %v2879_v25 = vmul.f32 -1.442695, %v4384_v16  ;;  %v2293_v5 = vadd.f32 1.0, %v3738_v31 }
 0x2a4   :  { %v4394_v50 = vpop.f32.mrf.mxu0  ;;  %3755 = vrcp.f32 %v2292_v63  ;;  %v3740_v40 = vpop.eup %3739 }
 0x2a5   :  { %v2882_v32 = vmul.f32 -1.442695, %v4394_v50  ;;  %3757 = vrcp.f32 %v2290_v58  ;;  %v2296_v61 = vadd.f32 1.0, %v3740_v40 }
 0x2a6   :  { %v4400_v28 = vpop.f32.mrf.mxu0  ;;  %v3742_v8 = vpop.eup %3741  ;;  %3759 = vrcp.f32 %v2291_v17 }
 0x2a7   :  { %v2880_v45 = vmul.f32 -1.442695, %v4400_v28  ;;  %v3744_v33 = vpop.eup %3743  ;;  %3761 = vpow2.f32 %v2879_v25  ;;  %v2294_v53 = vadd.f32 1.0, %v3742_v8 }
 0x2a8   :  { %v4410_v21 = vpop.f32.mrf.mxu0  ;;  %3763 = vpow2.f32 %v2882_v32  ;;  %v2295_v62 = vadd.f32 1.0, %v3744_v33 }
 0x2a9   :  { %3765 = vpow2.f32 %v2880_v45  ;;  %v2885_v17 = vmul.f32 -1.442695, %v4410_v21 }
 0x2aa   :  { %v4416_v12 = vpop.f32.mrf.mxu0  ;;  %3767 = vpow2.f32 %v2881_v29  ;;  %v3746_v56 = vpop.eup %3745 }
 0x2ab   :  { %3769 = vrcp.f32 %v2293_v5  ;;  %v2883_v47 = vmul.f32 -1.442695, %v4416_v12  ;;  %v2297_v40 = vadd.f32 1.0, %v3746_v56 }
 0x2ac   :  { %v4426_v18 = vpop.f32.mrf.mxu0  ;;  %3771 = vrcp.f32 %v2296_v61  ;;  %v3748_v3 = vpop.eup %3747 }
 0x2ad   :  { %v2886_v10 = vmul.f32 -1.442695, %v4426_v18  ;;  %3773 = vrcp.f32 %v2294_v53  ;;  %v2300_v8 = vadd.f32 1.0, %v3748_v3 }
 0x2ae   :  { %v4432_v7 = vpop.f32.mrf.mxu0  ;;  %v3750_v58 = vpop.eup %3749  ;;  %3775 = vrcp.f32 %v2295_v62 }
 0x2af   :  { %v2884_v63 = vmul.f32 -1.442695, %v4432_v7  ;;  %v3752_v32 = vpop.eup %3751  ;;  %3777 = vpow2.f32 %v2883_v47  ;;  %v2298_v5 = vadd.f32 1.0, %v3750_v58 }
 0x2b0   :  { %v4442_v24 = vpop.f32.mrf.mxu0  ;;  %v3754_v45 = vpop.eup %3753  ;;  %3779 = vpow2.f32 %v2886_v10  ;;  %v2299_v53 = vadd.f32 1.0, %v3752_v32 }
 0x2b1   :  { %v3756_v33 = vpop.eup %3755  ;;  %3781 = vpow2.f32 %v2884_v63  ;;  %v2361_v63 = vmul.f32 %v3754_v45, %v4350_v51 }
 0x2b2   :  { %v4448_v34 = vpop.f32.mrf.mxu0  ;;  %v3758_v61 = vpop.eup %3757  ;;  %3783 = vpow2.f32 %v2885_v17  ;;  %v2364_v47 = vmul.f32 %v3756_v33, %v4352_v52 }
 0x2b3   :  { %3785 = vrcp.f32 %v2297_v40  ;;  %v2362_v58 = vmul.f32 %v3758_v61, %v4354_v55 }
 0x2b4   :  { %v4458_v25 = vpop.f32.mrf.mxu0  ;;  %3787 = vrcp.f32 %v2300_v8 }
 0x2b5   :  { %v2890_v56 = vmul.f32 -1.442695, %v4458_v25  ;;  %3789 = vrcp.f32 %v2298_v5 }
 0x2b6   :  { %v4462_v62 = vpop.f32.mrf.mxu0 }
 0x2b7   :  { %v2888_v17 = vmul.f32 -1.442695, %v4462_v62 }
 0x2f6   :  { %v4370_v54 = vpop.f32.mrf.mxu1 }
 0x2f8   :  { %v4374_v13 = vpop.f32.mrf.mxu1 }
 0x2fa   :  { %v4376_v9 = vpop.f32.mrf.mxu1 }
 0x2fc   :  { %v4380_v30 = vpop.f32.mrf.mxu1 }
 0x2fe   :  { %v4382_v60 = vpop.f32.mrf.mxu1 }
 0x300   :  { %v4386_v38 = vpop.f32.mrf.mxu1 }
 0x302   :  { %v4390_v19 = vpop.f32.mrf.mxu1 }
 0x304   :  { %v4396_v57 = vpop.f32.mrf.mxu1 }
 0x306   :  { %v4398_v4 = vpop.f32.mrf.mxu1 }
 0x308   :  { %v4402_v1 = vpop.f32.mrf.mxu1 }
 0x30a   :  { %v4406_v48 = vpop.f32.mrf.mxu1 }
 0x30c   :  { %v4412_v42 = vpop.f32.mrf.mxu1 }
 0x30e   :  { %v4414_v43 = vpop.f32.mrf.mxu1 }
 0x310   :  { %v4418_v14 = vpop.f32.mrf.mxu1 }
 0x312   :  { %v4422_v49 = vpop.f32.mrf.mxu1 }
 0x313   :  { %4574 = vst [vmem:[#allocation37_spill] sm:$0xff] %v4422_v49 }
 0x314   :  { %v4428_v26 = vpop.f32.mrf.mxu1 }
 0x315   :  { %4575 = vst [vmem:[#allocation38_spill] sm:$0xff] %v4428_v26 }
 0x316   :  { %v4430_v11 = vpop.f32.mrf.mxu1 }
 0x317   :  { %4576 = vst [vmem:[#allocation39_spill] sm:$0xff] %v4430_v11 }
 0x318   :  { %v4434_v23 = vpop.f32.mrf.mxu1 }
 0x319   :  { %4577 = vst [vmem:[#allocation40_spill] sm:$0xff] %v4434_v23 }
 0x31a   :  { %v4438_v39 = vpop.f32.mrf.mxu1 }
 0x31b   :  { %4578 = vst [vmem:[#allocation41_spill] sm:$0xff] %v4438_v39 }
 0x31c   :  { %v4444_v27 = vpop.f32.mrf.mxu1 }
 0x31d   :  { %4579 = vst [vmem:[#allocation42_spill] sm:$0xff] %v4444_v27  ;;  %v2889_v27 = vmul.f32 -1.442695, %v4442_v24 }
 0x31e   :  { %v4446_v20 = vpop.f32.mrf.mxu1 }
 0x31f   :  { %4580 = vst [vmem:[#allocation43_spill] sm:$0xff] %v4446_v20 }
 0x320   :  { %v4450_v2 = vpop.f32.mrf.mxu1 }
 0x321   :  { %4581 = vst [vmem:[#allocation44_spill] sm:$0xff] %v4450_v2  ;;  %v3760_v2 = vpop.eup %3759  ;;  %3791 = vrcp.f32 %v2299_v53 }
 0x322   :  { %v4454_v41 = vpop.f32.mrf.mxu1  ;;  %v3762_v20 = vpop.eup %3761  ;;  %v2363_v40 = vmul.f32 %v3760_v2, %v4348_v46 }
 0x323   :  { %4582 = vst [vmem:[#allocation45_spill] sm:$0xff] %v4454_v41  ;;  %v3764_v3 = vpop.eup %3763  ;;  %v2301_v33 = vadd.f32 1.0, %v3762_v20 }
 0x324   :  { %v4460_v31 = vpop.f32.mrf.mxu1  ;;  %v3766_v32 = vpop.eup %3765  ;;  %v2304_v51 = vadd.f32 1.0, %v3764_v3 }
 0x325   :  { %4583 = vst [vmem:[#allocation46_spill] sm:$0xff] %v4460_v31  ;;  %v2887_v31 = vmul.f32 -1.442695, %v4448_v34  ;;  %v3768_v8 = vpop.eup %3767  ;;  %v2302_v61 = vadd.f32 1.0, %v3766_v32 }
 0x326   :  { %v3377_v29 = vpop.f32.mrf.mxu1  ;;  %v3770_v26 = vpop.eup %3769  ;;  %v2303_v2 = vadd.f32 1.0, %v3768_v8 }
 0x327   :  { %3793 = vpow2.f32 %v2887_v31  ;;  %v2387_v55 = vmul.f32 %v3377_v29, %v2363_v40  ;;  %v3772_v5 = vpop.eup %3771 }
 0x328   :  { %v2122_v41 = vpop.f32.mrf.mxu1  ;;  %3795 = vpow2.f32 %v2890_v56  ;;  %v3774_v46 = vpop.eup %3773  ;;  %v2365_v56 = vmul.f32 %v3770_v26, %v4358_v0 }
 0x329   :  { %v2385_v23 = vmul.f32 %v2361_v63, %v2122_v41  ;;  %3797 = vpow2.f32 %v2888_v17  ;;  %v2368_v41 = vmul.f32 %v3772_v5, %v4360_v37  ;;  %v2366_v3 = vmul.f32 %v3774_v46, %v4362_v59 }
 0x32a   :  { %v3378_v10 = vpop.f32.mrf.mxu1  ;;  %3799 = vpow2.f32 %v2889_v27 }
 0x32b   :  { %v2388_v39 = vmul.f32 %v3378_v10, %v2364_v47  ;;  %v3776_v10 = vpop.eup %3775  ;;  %3801 = vrcp.f32 %v2301_v33 }
 0x32c   :  { %v2125_v52 = vpop.f32.mrf.mxu1  ;;  %v3778_v20 = vpop.eup %3777  ;;  %3803 = vrcp.f32 %v2304_v51 }
 0x32d   :  { %v2386_v11 = vmul.f32 %v2362_v58, %v2125_v52  ;;  %v2410_v53 = vpack.c.bf16 %v2388_v39, %v2387_v55  ;;  %v3780_v29 = vpop.eup %3779  ;;  %3805 = vrcp.f32 %v2302_v61 }
 0x32e   :  { %v3381_v45 = vpop.f32.mrf.mxu1  ;;  %3807 = vrcp.f32 %v2303_v2  ;;  %v2308_v32 = vadd.f32 1.0, %v3780_v29 }
 0x32f   :  { %v2409_v49 = vpack.c.bf16 %v2386_v11, %v2385_v23  ;;  %v3782_v11 = vpop.eup %3781  ;;  %v2367_v23 = vmul.f32 %v3776_v10, %v4356_v6 }
 0x330   :  { %v2138_v47 = vpop.f32.mrf.mxu1  ;;  %v3784_v63 = vpop.eup %3783  ;;  %v2306_v33 = vadd.f32 1.0, %v3782_v11 }
 0x331   :  { %3415 = vmatprep.mubr.bf16.mxu0 %v2409_v49  ;;  %v2305_v49 = vadd.f32 1.0, %v3778_v20  ;;  %v2389_v58 = vmul.f32 %v2365_v56, %v2138_v47  ;;  %v3786_v37 = vpop.eup %3785  ;;  %v2391_v40 = vmul.f32 %v3381_v45, %v2367_v23  ;;  %v2307_v59 = vadd.f32 1.0, %v3784_v63 }
 0x332   :  { %v3382_v31 = vpop.f32.mrf.mxu1  ;;  %3416 = vmatmul.mubr.bf16.vlgmr.msra.gmra.mxu0 %v2410_v53  ;;  %v3788_v8 = vpop.eup %3787  ;;  %v2369_v45 = vmul.f32 %v3786_v37, %v4366_v35 }
 0x333   :  { %v2392_v39 = vmul.f32 %v3382_v31, %v2368_v41  ;;  %v3790_v26 = vpop.eup %3789  ;;  %3809 = vrcp.f32 %v2305_v49  ;;  %v2372_v61 = vmul.f32 %v3788_v8, %v4368_v22 }
 0x334   :  { %v2141_v27 = vpop.f32.mrf.mxu1  ;;  %v3792_v5 = vpop.eup %3791  ;;  %3811 = vrcp.f32 %v2308_v32  ;;  %v2370_v53 = vmul.f32 %v3790_v26, %v4372_v15 }
 0x335   :  { %v2390_v17 = vmul.f32 %v2366_v3, %v2141_v27  ;;  %v2412_v51 = vpack.c.bf16 %v2392_v39, %v2391_v40  ;;  %v3794_v6 = vpop.eup %3793  ;;  %3813 = vrcp.f32 %v2306_v33  ;;  %v2371_v10 = vmul.f32 %v3792_v5, %v4364_v36 }
 0x336   :  { %v3385_v52 = vpop.f32.mrf.mxu1  ;;  %v3796_v2 = vpop.eup %3795  ;;  %3815 = vrcp.f32 %v2307_v59  ;;  %v2309_v29 = vadd.f32 1.0, %v3794_v6 }
 0x337   :  { %v2411_v0 = vpack.c.bf16 %v2390_v17, %v2389_v58  ;;  %v3798_v47 = vpop.eup %3797  ;;  %v2312_v11 = vadd.f32 1.0, %v3796_v2  ;;  %v2395_v23 = vmul.f32 %v3385_v52, %v2371_v10 }
 0x338   :  { %v2154_v55 = vpop.f32.mrf.mxu1  ;;  %v3800_v31 = vpop.eup %3799  ;;  %v2310_v63 = vadd.f32 1.0, %v3798_v47  ;;  %3817 = vrcp.f32 %v2309_v29 }
 0x339   :  { %3419 = vmatprep.mubr.bf16.mxu0 %v2411_v0  ;;  %v2393_v56 = vmul.f32 %v2369_v45, %v2154_v55  ;;  %v3802_v22 = vpop.eup %3801  ;;  %v2311_v15 = vadd.f32 1.0, %v3800_v31  ;;  %3819 = vrcp.f32 %v2312_v11 }
 0x33a   :  { %v3386_v46 = vpop.f32.mrf.mxu1  ;;  %3420 = vmatmul.mubr.bf16.gmra.mxu0 %v2412_v51  ;;  %v3804_v27 = vpop.eup %3803  ;;  %v2373_v40 = vmul.f32 %v3802_v22, %v4384_v16  ;;  %3821 = vrcp.f32 %v2310_v63 }
 0x33b   :  { %v2396_v20 = vmul.f32 %v3386_v46, %v2372_v61  ;;  %v3806_v49 = vpop.eup %3805  ;;  %v2376_v36 = vmul.f32 %v3804_v27, %v4394_v50  ;;  %3823 = vrcp.f32 %v2311_v15 }
 0x33c   :  { %v2157_v41 = vpop.f32.mrf.mxu1  ;;  %v3808_v37 = vpop.eup %3807  ;;  %v2374_v52 = vmul.f32 %v3806_v49, %v4400_v28 }
 0x33d   :  { %v2394_v3 = vmul.f32 %v2370_v53, %v2157_v41  ;;  %v2414_v58 = vpack.c.bf16 %v2396_v20, %v2395_v23  ;;  %v2375_v8 = vmul.f32 %v3808_v37, %v4378_v44 }
 0x33e   :  { %v3389_v39 = vpop.f32.mrf.mxu1 }
 0x33f   :  { %v2413_v35 = vpack.c.bf16 %v2394_v3, %v2393_v56  ;;  %v2399_v55 = vmul.f32 %v3389_v39, %v2375_v8  ;;  %v4585_v8 = vld [vmem:[#allocation14_spill] sm:$0xff] }
 0x340   :  { %v2170_v17 = vpop.f32.mrf.mxu1  ;;  %v3810_v51 = vpop.eup %3809 }
 0x341   :  { %3423 = vmatprep.mubr.bf16.mxu0 %v2413_v35  ;;  %v2397_v26 = vmul.f32 %v2373_v40, %v2170_v17  ;;  %v3812_v6 = vpop.eup %3811  ;;  %v2377_v44 = vmul.f32 %v3810_v51, %v4416_v12  ;;  %v4584_v40 = vld [vmem:[#allocation13_spill] sm:$0xff]  ;;  %v4587_v51 = vld [vmem:[#allocation16_spill] sm:$0xff] }
 0x342   :  { %v3390_v32 = vpop.f32.mrf.mxu1  ;;  %3424 = vmatmul.mubr.bf16.gmra.mxu0 %v2414_v58  ;;  %v3814_v61 = vpop.eup %3813  ;;  %v2380_v16 = vmul.f32 %v3812_v6, %v4426_v18 }
 0x343   :  { %v2400_v33 = vmul.f32 %v3390_v32, %v2376_v36  ;;  %v3816_v45 = vpop.eup %3815  ;;  %v2378_v53 = vmul.f32 %v3814_v61, %v4432_v7 }
 0x344   :  { %v2173_v0 = vpop.f32.mrf.mxu1  ;;  %v2379_v47 = vmul.f32 %v3816_v45, %v4410_v21 }
 0x345   :  { %v2398_v59 = vmul.f32 %v2374_v52, %v2173_v0  ;;  %v2416_v46 = vpack.c.bf16 %v2400_v33, %v2399_v55  ;;  %v3818_v29 = vpop.eup %3817  ;;  %v4586_v0 = vld [vmem:[#allocation15_spill] sm:$0xff]  ;;  %v1784_v55 = vadd.f32 %v4380_v30, %v4587_v51 }
 0x346   :  { %v3393_v5 = vpop.f32.mrf.mxu1  ;;  %v3820_v22 = vpop.eup %3819  ;;  %v2381_v21 = vmul.f32 %v3818_v29, %v4448_v34  ;;  %v1783_v34 = vadd.f32 %v4374_v13, %v4585_v8  ;;  %v4593_v29 = vld [vmem:[#allocation22_spill] sm:$0xff]  ;;  %v4603_v8 = vld [vmem:[#allocation39_spill] sm:$0xff] }
 0x347   :  { %v2415_v50 = vpack.c.bf16 %v2398_v59, %v2397_v26  ;;  %v2403_v56 = vmul.f32 %v3393_v5, %v2379_v47  ;;  %v3822_v23 = vpop.eup %3821  ;;  %v2384_v12 = vmul.f32 %v3820_v22, %v4458_v25  ;;  %v1785_v25 = vadd.f32 %v4370_v54, %v4584_v40  ;;  %v4594_v22 = vld [vmem:[#allocation23_spill] sm:$0xff] }
 0x348   :  { %v2186_v2 = vpop.f32.mrf.mxu1  ;;  %v3824_v27 = vpop.eup %3823  ;;  %v2382_v7 = vmul.f32 %v3822_v23, %v4462_v62  ;;  %v4606_v51 = vld [vmem:[#allocation31_spill] sm:$0xff] }
 0x349   :  { %3427 = vmatprep.mubr.bf16.mxu1 %v2415_v50  ;;  %v2401_v41 = vmul.f32 %v2377_v44, %v2186_v2  ;;  %v2383_v35 = vmul.f32 %v3824_v27, %v4442_v24  ;;  %v1786_v24 = vadd.f32 %v4376_v9, %v4586_v0  ;;  %v4588_v50 = vld [vmem:[#allocation17_spill] sm:$0xff]  ;;  %v4605_v0 = vld [vmem:[#allocation40_spill] sm:$0xff] }
 0x34a   :  { %v3394_v28 = vpop.f32.mrf.mxu1  ;;  %3428 = vmatmul.mubr.bf16.vlgmr.msra.gmra.mxu1 %v2416_v46  ;;  %v1789_v54 = vadd.f32 %v4382_v60, %v4588_v50  ;;  %v4589_v46 = vld [vmem:[#allocation18_spill] sm:$0xff] }
 0x34b   :  { %v2404_v10 = vmul.f32 %v3394_v28, %v2380_v16  ;;  %v1787_v2 = vadd.f32 %v4386_v38, %v4589_v46  ;;  %v4590_v16 = vld [vmem:[#allocation19_spill] sm:$0xff] }
 0x34c   :  { %v2189_v20 = vpop.f32.mrf.mxu1  ;;  %v1790_v28 = vadd.f32 %v4390_v19, %v4590_v16 }
 0x34d   :  { %v2402_v31 = vmul.f32 %v2378_v53, %v2189_v20  ;;  %v2418_v39 = vpack.c.bf16 %v2404_v10, %v2403_v56  ;;  %v4591_v53 = vld [vmem:[#allocation20_spill] sm:$0xff]  ;;  %v4592_v20 = vld [vmem:[#allocation21_spill] sm:$0xff]  ;;  %v1791_v56 = vadd.f32 %v4402_v1, %v4593_v29 }
 0x34e   :  { %v3397_v3 = vpop.f32.mrf.mxu1  ;;  %v1788_v47 = vadd.f32 %v4396_v57, %v4591_v53  ;;  %v4613_v53 = vld [vmem:[#allocation44_spill] sm:$0xff] }
 0x34f   :  { %v2417_v11 = vpack.c.bf16 %v2402_v31, %v2401_v41  ;;  %v2407_v37 = vmul.f32 %v3397_v3, %v2383_v35  ;;  %v1793_v41 = vadd.f32 %v4398_v4, %v4592_v20  ;;  %v4614_v20 = vld [vmem:[#allocation35_spill] sm:$0xff] }
 0x350   :  { %v2202_v18 = vpop.f32.mrf.mxu1 }
 0x351   :  { %3431 = vmatprep.mubr.bf16.mxu1 %v2417_v11  ;;  %v2405_v58 = vmul.f32 %v2381_v21, %v2202_v18  ;;  %v1794_v11 = vadd.f32 %v4406_v48, %v4594_v22 }
 0x352   :  { %v3398_v63 = vpop.f32.mrf.mxu1  ;;  %3432 = vmatmul.mubr.bf16.gmra.mxu1 %v2418_v39  ;;  %v4595_v39 = vld [vmem:[#allocation24_spill] sm:$0xff] }
 0x353   :  { %v2408_v49 = vmul.f32 %v3398_v63, %v2384_v12  ;;  %v1792_v18 = vadd.f32 %v4412_v42, %v4595_v39  ;;  %v4596_v12 = vld [vmem:[#allocation25_spill] sm:$0xff] }
 0x354   :  { %v2205_v15 = vpop.f32.mrf.mxu1  ;;  %v1797_v63 = vadd.f32 %v4414_v43, %v4596_v12 }
 0x355   :  { %v2406_v17 = vmul.f32 %v2382_v7, %v2205_v15  ;;  %v2420_v32 = vpack.c.bf16 %v2408_v49, %v2407_v37  ;;  %v4597_v7 = vld [vmem:[#allocation26_spill] sm:$0xff]  ;;  %v4598_v15 = vld [vmem:[#allocation27_spill] sm:$0xff] }
 0x356   :  { %v1795_v35 = vadd.f32 %v4418_v14, %v4597_v7 }
 0x357   :  { %v2419_v36 = vpack.c.bf16 %v2406_v17, %v2405_v58  ;;  %v4599_v58 = vld [vmem:[#allocation37_spill] sm:$0xff] }
 0x358   :  { %v1798_v17 = vadd.f32 %v4599_v58, %v4598_v15 }
 0x359   :  { %3435 = vmatprep.mubr.bf16.mxu1 %v2419_v36  ;;  %v4600_v36 = vld [vmem:[#allocation28_spill] sm:$0xff] }
 0x35a   :  { %3436 = vmatmul.mubr.bf16.gmra.mxu1 %v2420_v32  ;;  %v4601_v32 = vld [vmem:[#allocation38_spill] sm:$0xff] }
 0x35b   :  { %v1796_v40 = vadd.f32 %v4601_v32, %v4600_v36 }
 0x3f2   :  { %v3417_v52 = vpop.f32.mrf.mxu0 }
 0x3f3   :  { %v2640_v33 = vadd.f32 %v3417_v52, %v1785_v25  ;;  %v4602_v52 = vld [vmem:[#allocation29_spill] sm:$0xff] }
 0x3f4   :  { %v2543_v62 = vpop.f32.mrf.mxu0 }
 0x3f5   :  { %2715 = vst [vmem:[#allocation9 + $0x10] sm:$0xff] %v2640_v33  ;;  %v2638_v26 = vadd.f32 %v2543_v62, %v1783_v34  ;;  %v1801_v34 = vadd.f32 %v4603_v8, %v4602_v52  ;;  %v4604_v62 = vld [vmem:[#allocation30_spill] sm:$0xff] }
 0x3f6   :  { %v3418_v59 = vpop.f32.mrf.mxu0 }
 0x3f7   :  { %2713 = vst [vmem:[#allocation9] sm:$0xff] %v2638_v26  ;;  %v2641_v5 = vadd.f32 %v3418_v59, %v1786_v24  ;;  %v1799_v24 = vadd.f32 %v4605_v0, %v4604_v62 }
 0x3f8   :  { %v2546_v6 = vpop.f32.mrf.mxu0 }
 0x3f9   :  { %2716 = vst [vmem:[#allocation9 + $0x18] sm:$0xff] %v2641_v5  ;;  %v2639_v61 = vadd.f32 %v2546_v6, %v1784_v55  ;;  %v4607_v55 = vld [vmem:[#allocation41_spill] sm:$0xff] }
 0x3fa   :  { %v3421_v13 = vpop.f32.mrf.mxu0  ;;  %v1802_v5 = vadd.f32 %v4607_v55, %v4606_v51 }
 0x3fb   :  { %2714 = vst [vmem:[#allocation9 + $0x8] sm:$0xff] %v2639_v61  ;;  %v2644_v9 = vadd.f32 %v3421_v13, %v1789_v54  ;;  %v4608_v54 = vld [vmem:[#allocation32_spill] sm:$0xff]  ;;  %v4609_v61 = vld [vmem:[#allocation42_spill] sm:$0xff] }
 0x3fc   :  { %v2559_v45 = vpop.f32.mrf.mxu0  ;;  %v1800_v13 = vadd.f32 %v4609_v61, %v4608_v54 }
 0x3fd   :  { %2719 = vst [vmem:[#allocation9 + $0x30] sm:$0xff] %v2644_v9  ;;  %v2642_v30 = vadd.f32 %v2559_v45, %v1787_v2  ;;  %v4610_v9 = vld [vmem:[#allocation33_spill] sm:$0xff]  ;;  %v4611_v45 = vld [vmem:[#allocation43_spill] sm:$0xff] }
 0x3fe   :  { %v3422_v44 = vpop.f32.mrf.mxu0  ;;  %v1805_v16 = vadd.f32 %v4611_v45, %v4610_v9 }
 0x3ff   :  { %2717 = vst [vmem:[#allocation9 + $0x20] sm:$0xff] %v2642_v30  ;;  %v2645_v60 = vadd.f32 %v3422_v44, %v1790_v28  ;;  %v4612_v44 = vld [vmem:[#allocation34_spill] sm:$0xff] }
 0x400   :  { %v2562_v10 = vpop.f32.mrf.mxu0 }
 0x401   :  { %2720 = vst [vmem:[#allocation9 + $0x38] sm:$0xff] %v2645_v60  ;;  %v2643_v38 = vadd.f32 %v2562_v10, %v1788_v47  ;;  %v1803_v47 = vadd.f32 %v4613_v53, %v4612_v44 }
 0x402   :  { %v3425_v31 = vpop.f32.mrf.mxu0 }
 0x403   :  { %2718 = vst [vmem:[#allocation9 + $0x28] sm:$0xff] %v2643_v38  ;;  %v2648_v19 = vadd.f32 %v3425_v31, %v1793_v41  ;;  %v4615_v41 = vld [vmem:[#allocation45_spill] sm:$0xff] }
 0x404   :  { %v2575_v3 = vpop.f32.mrf.mxu0  ;;  %v1806_v38 = vadd.f32 %v4615_v41, %v4614_v20 }
 0x405   :  { %2723 = vst [vmem:[#allocation9 + $0x50] sm:$0xff] %v2648_v19  ;;  %v2646_v57 = vadd.f32 %v2575_v3, %v1791_v56  ;;  %v4616_v56 = vld [vmem:[#allocation36_spill] sm:$0xff]  ;;  %v4617_v19 = vld [vmem:[#allocation46_spill] sm:$0xff] }
 0x406   :  { %v3426_v23 = vpop.f32.mrf.mxu0  ;;  %v1804_v3 = vadd.f32 %v4617_v19, %v4616_v56 }
 0x407   :  { %2721 = vst [vmem:[#allocation9 + $0x40] sm:$0xff] %v2646_v57  ;;  %v2649_v4 = vadd.f32 %v3426_v23, %v1794_v11 }
 0x408   :  { %v2578_v27 = vpop.f32.mrf.mxu0 }
 0x409   :  { %2724 = vst [vmem:[#allocation9 + $0x58] sm:$0xff] %v2649_v4  ;;  %v2647_v1 = vadd.f32 %v2578_v27, %v1792_v18 }
 0x40a   :  { %v3429_v21 = vpop.f32.mrf.mxu1 }
 0x40b   :  { %2722 = vst [vmem:[#allocation9 + $0x48] sm:$0xff] %v2647_v1  ;;  %v2652_v48 = vadd.f32 %v3429_v21, %v1797_v63 }
 0x40c   :  { %v2591_v49 = vpop.f32.mrf.mxu1 }
 0x40d   :  { %2727 = vst [vmem:[#allocation9 + $0x70] sm:$0xff] %v2652_v48  ;;  %v2650_v42 = vadd.f32 %v2591_v49, %v1795_v35 }
 0x40e   :  { %v3430_v37 = vpop.f32.mrf.mxu1 }
 0x40f   :  { %2725 = vst [vmem:[#allocation9 + $0x60] sm:$0xff] %v2650_v42  ;;  %v2653_v43 = vadd.f32 %v3430_v37, %v1798_v17 }
 0x410   :  { %v2594_v25 = vpop.f32.mrf.mxu1 }
 0x411   :  { %2728 = vst [vmem:[#allocation9 + $0x78] sm:$0xff] %v2653_v43  ;;  %v2651_v14 = vadd.f32 %v2594_v25, %v1796_v40 }
 0x412   :  { %v3433_v33 = vpop.f32.mrf.mxu1 }
 0x413   :  { %2726 = vst [vmem:[#allocation9 + $0x68] sm:$0xff] %v2651_v14  ;;  %v2656_v26 = vadd.f32 %v3433_v33, %v1801_v34 }
 0x414   :  { %v2607_v59 = vpop.f32.mrf.mxu1 }
 0x415   :  { %2731 = vst [vmem:[#allocation9 + $0x90] sm:$0xff] %v2656_v26  ;;  %v2654_v6 = vadd.f32 %v2607_v59, %v1799_v24 }
 0x416   :  { %v3434_v50 = vpop.f32.mrf.mxu1 }
 0x417   :  { %2729 = vst [vmem:[#allocation9 + $0x80] sm:$0xff] %v2654_v6  ;;  %v2657_v46 = vadd.f32 %v3434_v50, %v1802_v5 }
 0x418   :  { %v2610_v2 = vpop.f32.mrf.mxu1 }
 0x419   :  { %2732 = vst [vmem:[#allocation9 + $0x98] sm:$0xff] %v2657_v46  ;;  %v2655_v28 = vadd.f32 %v2610_v2, %v1800_v13 }
 0x41a   :  { %v3437_v30 = vpop.f32.mrf.mxu1 }
 0x41b   :  { %2730 = vst [vmem:[#allocation9 + $0x88] sm:$0xff] %v2655_v28  ;;  %v2660_v60 = vadd.f32 %v3437_v30, %v1805_v16 }
 0x41c   :  { %v2623_v10 = vpop.f32.mrf.mxu1 }
 0x41d   :  { %2735 = vst [vmem:[#allocation9 + $0xb0] sm:$0xff] %v2660_v60  ;;  %v2658_v31 = vadd.f32 %v2623_v10, %v1803_v47 }
 0x41e   :  { %v3438_v29 = vpop.f32.mrf.mxu1 }
 0x41f   :  { %2733 = vst [vmem:[#allocation9 + $0xa0] sm:$0xff] %v2658_v31  ;;  %v2661_v22 = vadd.f32 %v3438_v29, %v1806_v38 }
 0x420   :  { %v2626_v11 = vpop.f32.mrf.mxu1 }
 0x421   :  { %2736 = vst [vmem:[#allocation9 + $0xb8] sm:$0xff] %v2661_v22  ;;  %v2659_v57 = vadd.f32 %v2626_v11, %v1804_v3 }
 0x423   :  { %2734 = vst [vmem:[#allocation9 + $0xa8] sm:$0xff] %v2659_v57 }
 0x424   :  { %3896 = shalt.err (!%p3893_p5)
}
 0x425   :  { %2748 = dma.vmem_to_hbm [thread:$0]  %s2743_s2, 3072, %s4549_s3, [#allocation5], %s3915_s22, %s3915_s22, %s3916_s23  }
 0x426   :  { %3909 = dma.done.wait [#allocation5], 3072  }
 0x427   :  { %3910 = vsyncadd [#allocation5], 4294964224 }
 0x428   :  { %2752 = vsyncpa [#allocation4], 1 }
 0x429   :  { %2753 = vsyncpa [#allocation7], 1 }
 0x42a   :  { %2754 = vsyncpa [#allocation5], 1 }

</bundles_post_ra>
